<compile_context>
chip_gen: v7x
topology: tpu7x:2x2x1
jax: 0.10.0
libtpu: 0.0.40
codegen_flags: <defaults>
</compile_context>

<pallas_src>
import numpy as np
import jax
import jax.numpy as jnp
from jax.experimental import pallas as pl
from jax.experimental.pallas import tpu as pltpu

# ---- synthetic module config (deterministic, small) ----
D = 4                       # config.uvw_deform_D
W = 32                      # config.uvw_deform_W
V_EMB = 4                   # vertices_pos_emb_dim_per_vertex
C_UVW = 3
C_VERT = V_EMB * 3          # 12
C_INIT = C_UVW + C_VERT     # input_ch_uvw_vert_feat = 15
P = 8                       # combined_pose_dim
C_X = C_INIT + P            # packed input rows = 23
SKIPS = [D // 2]
N = 1600                    # number of sample points (deliberately not 128-aligned)

MAX_TN = 2048               # cap on lanes per grid step (production-sized N)
MIN_STEPS = 2               # keep >= 2 steps so both v7x TCs get work (use 1 on v5e/v6e)

# Streaming dtype for activations/weights; accumulation is always f32.
ACT_DTYPE = jnp.bfloat16

# ---- packed weight slab layout: one 128-aligned group per linear + warp head ----
GROUP = 128
WARP_OFF = D * GROUP                 # 512
W_SLAB_COLS = WARP_OFF + GROUP       # 640


def build_layer_specs():
    """Ordered pieces of each hidden linear's (concatenated) input, matching the
    torch forward's cat order.  Pieces are ('x', row_off, rows) slices of the
    packed (23, TN) input slab, or ('h', 0, W) for the previous activation."""
    init = ('x', 0, C_INIT)
    pose = ('x', C_INIT, P)
    specs = [[init]]                          # linear[0]: cat([uvw, vert])
    for i in range(D - 1):                    # linear[i+1]
        cur = [('h', 0, W)]
        if i == 0:
            cur = cur + [pose]                # h = cat([h, pose])
        if i + 1 in SKIPS:
            cur = [init] + cur                # h = cat([initial, h])
        specs.append(cur)
    return specs


LAYER_SPECS = build_layer_specs()
IN_DIMS = [sum(p[2] for p in pieces) for pieces in LAYER_SPECS]   # [15, 40, 47, 32]
assert all(d + 1 <= GROUP for d in IN_DIMS)


def init_params(key):
    """Deterministic synthetic init mirroring the module's __init__
    (weights in torch (out_features, in_features) layout)."""
    params = []
    for in_dim in IN_DIMS:
        key, sub = jax.random.split(key)
        bound = 1.0 / np.sqrt(in_dim)
        w = jax.random.uniform(sub, (W, in_dim), jnp.float32, -bound, bound)
        b = jnp.zeros((W,), jnp.float32)
        params.append((w, b))
    key, sub = jax.random.split(key)
    warp_w = (1e-5 * jax.random.normal(sub, (3, W))).astype(jnp.float32)
    warp_b = jnp.zeros((3,), jnp.float32)
    return params, (warp_w, warp_b)


def pack_params(linear_params, warp_params, dtype=ACT_DTYPE):
    """Pack all 10 parameter arrays into one resident slab.
    Group l (hidden layer l) is columns [l*128, l*128+in_dim) = weight,
    column l*128+in_dim = bias.  The warp head lives at columns [512, 545),
    rows 0:3.  Column order inside a group matches the torch concat order."""
    slab = np.zeros((W, W_SLAB_COLS), np.float32)
    for l, (w, b) in enumerate(linear_params):
        in_dim = w.shape[1]
        off = l * GROUP
        slab[:, off:off + in_dim] = np.asarray(w)
        slab[:, off + in_dim] = np.asarray(b)
    ww, wb = warp_params
    slab[:3, WARP_OFF:WARP_OFF + W] = np.asarray(ww)
    slab[:3, WARP_OFF + W] = np.asarray(wb)
    return jnp.asarray(slab, dtype=dtype)


def uvw_deform_kernel(x_ref, wslab_ref, out_ref):
    # x_ref: (23, TN) feature-major input slab (batch on the 128-lane axis)
    # wslab_ref: (32, 640) resident packed weights
    h = None
    for l, pieces in enumerate(LAYER_SPECS):
        base, in_dim = l * GROUP, IN_DIMS[l]
        # bias column -> (W, 1), broadcast over lanes; accumulate in f32
        acc = wslab_ref[:, base + in_dim:base + in_dim + 1].astype(jnp.float32)
        col = base
        for kind, r0, dim in pieces:
            # torch `cat(...) -> Linear` == sum of partial matmuls over
            # statically sliced weight columns (identical math, no concat).
            src = x_ref[r0:r0 + dim, :] if kind == 'x' else h
            acc = acc + jnp.dot(wslab_ref[:, col:col + dim], src,
                                preferred_element_type=jnp.float32)
            col += dim
        h = jnp.maximum(acc, 0.0).astype(ACT_DTYPE)        # ReLU, (W, TN)
    warp_w = wslab_ref[0:3, WARP_OFF:WARP_OFF + W]                      # (3, W)
    warp_b = wslab_ref[0:3, WARP_OFF + W:WARP_OFF + W + 1].astype(jnp.float32)
    out = jnp.dot(warp_w, h, preferred_element_type=jnp.float32) + warp_b  # (3, TN)
    out_ref[...] = out.astype(out_ref.dtype)


def choose_tiling(n, *, max_tn=MAX_TN, min_steps=MIN_STEPS):
    """Lane-aligned tile size / grid so there are few, large steps."""
    n128 = pl.cdiv(n, 128) * 128
    steps = max(min_steps, pl.cdiv(n128, max_tn))
    tn = pl.cdiv(n128, steps * 128) * 128
    return tn, steps, tn * steps


def uvw_deform_forward(uvw, vert_emb, pose_emb, w_slab):
    n = uvw.shape[0]
    tn, steps, n_pad = choose_tiling(n)

    # single feature-major input slab (23, n_pad): rows [uvw | vert | pose]
    x = jnp.concatenate([uvw, vert_emb, pose_emb], axis=-1).astype(ACT_DTYPE).T
    if n_pad != n:
        x = jnp.pad(x, ((0, 0), (0, n_pad - n)))

    out_t = pl.pallas_call(
        uvw_deform_kernel,
        out_shape=jax.ShapeDtypeStruct((3, n_pad), jnp.float32),
        grid_spec=pltpu.PrefetchScalarGridSpec(
            num_scalar_prefetch=0,
            grid=(steps,),
            in_specs=[
                pl.BlockSpec((C_X, tn), lambda i: (0, i)),        # input tile
                pl.BlockSpec(w_slab.shape, lambda i: (0, 0)),     # resident weights
            ],
            out_specs=pl.BlockSpec((3, tn), lambda i: (0, i)),    # lane-dense store
        ),
        compiler_params=pltpu.CompilerParams(
            dimension_semantics=("parallel",)),
    )(x, w_slab)
    return {'d_uvw': out_t[:, :n].T}                 # back to the module's (n, 3)


def reference_forward(uvw, vert_emb, pose_emb, linear_params, warp_params):
    """Pure-numpy replica of the torch forward (with concats) for checking."""
    h = np.concatenate([uvw, vert_emb], axis=-1)
    initial = h
    for i, (w, b) in enumerate(linear_params):
        h = np.maximum(h @ w.T + b, 0.0)
        if i == 0:
            h = np.concatenate([h, pose_emb], axis=-1)
        if i + 1 in SKIPS:
            h = np.concatenate([initial, h], axis=-1)
    ww, wb = warp_params
    return h @ ww.T + wb


if __name__ == "__main__":
    key = jax.random.PRNGKey(0)
    k1, k2, k3, kp = jax.random.split(key, 4)
    uvw = jax.random.normal(k1, (N, C_UVW), jnp.float32)
    vert_emb = jax.random.normal(k2, (N, C_VERT), jnp.float32)
    pose_emb = jax.random.normal(k3, (N, P), jnp.float32)
    linear_params, warp_params = init_params(kp)
    w_slab = pack_params(linear_params, warp_params)

    out = uvw_deform_forward(uvw, vert_emb, pose_emb, w_slab)
    d_uvw = np.asarray(jax.block_until_ready(out['d_uvw']))

    ref = reference_forward(
        np.asarray(uvw), np.asarray(vert_emb), np.asarray(pose_emb),
        [(np.asarray(w), np.asarray(b)) for w, b in linear_params],
        (np.asarray(warp_params[0]), np.asarray(warp_params[1])))

    assert d_uvw.shape == (N, 3)
    scale = max(float(np.max(np.abs(ref))), 1e-8)
    err = float(np.max(np.abs(d_uvw - ref)))
    # dtype-dependent tolerance: f32 path is (near-)exact, bf16 streaming with
    # f32 accumulation lands at ~1e-3..1e-2 relative error.
    tol = 1e-5 if ACT_DTYPE == jnp.float32 else 5e-2 * scale + 2e-6
    assert err <= tol, f"max abs error {err} (tol {tol}, scale {scale})"
    print("KERNEL_OK")
</pallas_src>

<mosaic_0001>
module attributes {stable_mosaic.version = 11 : i64} {
  func.func @uvw_deform_kernel(%arg0: i32, %arg1: memref<23x896xbf16, #tpu.memory_space<vmem>>, %arg2: memref<32x640xbf16, #tpu.memory_space<vmem>>, %arg3: memref<3x896xf32, #tpu.memory_space<vmem>>) attributes {dimension_semantics = [#tpu.dimension_semantics<parallel>], iteration_bounds = array<i64: 2>, scalar_prefetch = 0 : i64, scratch_operands = 0 : i64, tpu.core_type = #tpu.core_type<tc>, window_params = [{transform_indices = @transform_0, window_bounds = array<i64: 23, 896>}, {pipeline_mode = #tpu.pipeline_mode<synchronous>, transform_indices = @transform_1, window_bounds = array<i64: 32, 640>}, {transform_indices = @transform_2, window_bounds = array<i64: 3, 896>}]} {
    %c0 = arith.constant 0 : index
    %c15 = arith.constant 15 : index
    %0 = vector.load %arg2[%c0, %c15] : memref<32x640xbf16, #tpu.memory_space<vmem>>, vector<32x1xbf16>
    %1 = arith.extf %0 : vector<32x1xbf16> to vector<32x1xf32>
    %c0_0 = arith.constant 0 : index
    %c0_1 = arith.constant 0 : index
    %2 = vector.load %arg1[%c0_0, %c0_1] : memref<23x896xbf16, #tpu.memory_space<vmem>>, vector<15x896xbf16>
    %c0_2 = arith.constant 0 : index
    %c0_3 = arith.constant 0 : index
    %3 = vector.load %arg2[%c0_2, %c0_3] : memref<32x640xbf16, #tpu.memory_space<vmem>>, vector<32x15xbf16>
    %cst = arith.constant dense<0.000000e+00> : vector<32x896xf32>
    %4 = tpu.matmul %3, %2, %cst {dimension_numbers = #tpu.dot_dimension_numbers<[1], [0], [0], [1], [0, 0, 1, 1], [], []>} : vector<32x15xbf16>, vector<15x896xbf16>, vector<32x896xf32> -> vector<32x896xf32>
    %5 = vector.broadcast %1 : vector<32x1xf32> to vector<32x896xf32>
    %6 = arith.addf %5, %4 : vector<32x896xf32>
    %cst_4 = arith.constant 0.000000e+00 : f32
    %7 = vector.broadcast %cst_4 : f32 to vector<32x896xf32>
    %8 = arith.maximumf %6, %7 : vector<32x896xf32>
    %9 = arith.truncf %8 : vector<32x896xf32> to vector<32x896xbf16>
    %c0_5 = arith.constant 0 : index
    %c168 = arith.constant 168 : index
    %10 = vector.load %arg2[%c0_5, %c168] : memref<32x640xbf16, #tpu.memory_space<vmem>>, vector<32x1xbf16>
    %11 = arith.extf %10 : vector<32x1xbf16> to vector<32x1xf32>
    %c0_6 = arith.constant 0 : index
    %c128 = arith.constant 128 : index
    %12 = vector.load %arg2[%c0_6, %c128] : memref<32x640xbf16, #tpu.memory_space<vmem>>, vector<32x32xbf16>
    %cst_7 = arith.constant dense<0.000000e+00> : vector<32x896xf32>
    %13 = tpu.matmul %12, %9, %cst_7 {dimension_numbers = #tpu.dot_dimension_numbers<[1], [0], [0], [1], [0, 0, 1, 1], [], []>} : vector<32x32xbf16>, vector<32x896xbf16>, vector<32x896xf32> -> vector<32x896xf32>
    %14 = vector.broadcast %11 : vector<32x1xf32> to vector<32x896xf32>
    %15 = arith.addf %14, %13 : vector<32x896xf32>
    %c15_8 = arith.constant 15 : index
    %c0_9 = arith.constant 0 : index
    %16 = vector.load %arg1[%c15_8, %c0_9] : memref<23x896xbf16, #tpu.memory_space<vmem>>, vector<8x896xbf16>
    %c0_10 = arith.constant 0 : index
    %c160 = arith.constant 160 : index
    %17 = vector.load %arg2[%c0_10, %c160] : memref<32x640xbf16, #tpu.memory_space<vmem>>, vector<32x8xbf16>
    %cst_11 = arith.constant dense<0.000000e+00> : vector<32x896xf32>
    %18 = tpu.matmul %17, %16, %cst_11 {dimension_numbers = #tpu.dot_dimension_numbers<[1], [0], [0], [1], [0, 0, 1, 1], [], []>} : vector<32x8xbf16>, vector<8x896xbf16>, vector<32x896xf32> -> vector<32x896xf32>
    %19 = arith.addf %15, %18 : vector<32x896xf32>
    %cst_12 = arith.constant 0.000000e+00 : f32
    %20 = vector.broadcast %cst_12 : f32 to vector<32x896xf32>
    %21 = arith.maximumf %19, %20 : vector<32x896xf32>
    %22 = arith.truncf %21 : vector<32x896xf32> to vector<32x896xbf16>
    %c0_13 = arith.constant 0 : index
    %c303 = arith.constant 303 : index
    %23 = vector.load %arg2[%c0_13, %c303] : memref<32x640xbf16, #tpu.memory_space<vmem>>, vector<32x1xbf16>
    %24 = arith.extf %23 : vector<32x1xbf16> to vector<32x1xf32>
    %c0_14 = arith.constant 0 : index
    %c0_15 = arith.constant 0 : index
    %25 = vector.load %arg1[%c0_14, %c0_15] : memref<23x896xbf16, #tpu.memory_space<vmem>>, vector<15x896xbf16>
    %c0_16 = arith.constant 0 : index
    %c256 = arith.constant 256 : index
    %26 = vector.load %arg2[%c0_16, %c256] : memref<32x640xbf16, #tpu.memory_space<vmem>>, vector<32x15xbf16>
    %cst_17 = arith.constant dense<0.000000e+00> : vector<32x896xf32>
    %27 = tpu.matmul %26, %25, %cst_17 {dimension_numbers = #tpu.dot_dimension_numbers<[1], [0], [0], [1], [0, 0, 1, 1], [], []>} : vector<32x15xbf16>, vector<15x896xbf16>, vector<32x896xf32> -> vector<32x896xf32>
    %28 = vector.broadcast %24 : vector<32x1xf32> to vector<32x896xf32>
    %29 = arith.addf %28, %27 : vector<32x896xf32>
    %c0_18 = arith.constant 0 : index
    %c271 = arith.constant 271 : index
    %30 = vector.load %arg2[%c0_18, %c271] : memref<32x640xbf16, #tpu.memory_space<vmem>>, vector<32x32xbf16>
    %cst_19 = arith.constant dense<0.000000e+00> : vector<32x896xf32>
    %31 = tpu.matmul %30, %22, %cst_19 {dimension_numbers = #tpu.dot_dimension_numbers<[1], [0], [0], [1], [0, 0, 1, 1], [], []>} : vector<32x32xbf16>, vector<32x896xbf16>, vector<32x896xf32> -> vector<32x896xf32>
    %32 = arith.addf %29, %31 : vector<32x896xf32>
    %cst_20 = arith.constant 0.000000e+00 : f32
    %33 = vector.broadcast %cst_20 : f32 to vector<32x896xf32>
    %34 = arith.maximumf %32, %33 : vector<32x896xf32>
    %35 = arith.truncf %34 : vector<32x896xf32> to vector<32x896xbf16>
    %c0_21 = arith.constant 0 : index
    %c416 = arith.constant 416 : index
    %36 = vector.load %arg2[%c0_21, %c416] : memref<32x640xbf16, #tpu.memory_space<vmem>>, vector<32x1xbf16>
    %37 = arith.extf %36 : vector<32x1xbf16> to vector<32x1xf32>
    %c0_22 = arith.constant 0 : index
    %c384 = arith.constant 384 : index
    %38 = vector.load %arg2[%c0_22, %c384] : memref<32x640xbf16, #tpu.memory_space<vmem>>, vector<32x32xbf16>
    %cst_23 = arith.constant dense<0.000000e+00> : vector<32x896xf32>
    %39 = tpu.matmul %38, %35, %cst_23 {dimension_numbers = #tpu.dot_dimension_numbers<[1], [0], [0], [1], [0, 0, 1, 1], [], []>} : vector<32x32xbf16>, vector<32x896xbf16>, vector<32x896xf32> -> vector<32x896xf32>
    %40 = vector.broadcast %37 : vector<32x1xf32> to vector<32x896xf32>
    %41 = arith.addf %40, %39 : vector<32x896xf32>
    %cst_24 = arith.constant 0.000000e+00 : f32
    %42 = vector.broadcast %cst_24 : f32 to vector<32x896xf32>
    %43 = arith.maximumf %41, %42 : vector<32x896xf32>
    %44 = arith.truncf %43 : vector<32x896xf32> to vector<32x896xbf16>
    %c0_25 = arith.constant 0 : index
    %c512 = arith.constant 512 : index
    %45 = vector.load %arg2[%c0_25, %c512] : memref<32x640xbf16, #tpu.memory_space<vmem>>, vector<3x32xbf16>
    %c0_26 = arith.constant 0 : index
    %c544 = arith.constant 544 : index
    %46 = vector.load %arg2[%c0_26, %c544] : memref<32x640xbf16, #tpu.memory_space<vmem>>, vector<3x1xbf16>
    %47 = arith.extf %46 : vector<3x1xbf16> to vector<3x1xf32>
    %cst_27 = arith.constant dense<0.000000e+00> : vector<3x896xf32>
    %48 = tpu.matmul %45, %44, %cst_27 {dimension_numbers = #tpu.dot_dimension_numbers<[1], [0], [0], [1], [0, 0, 1, 1], [], []>} : vector<3x32xbf16>, vector<32x896xbf16>, vector<3x896xf32> -> vector<3x896xf32>
    %49 = vector.broadcast %47 : vector<3x1xf32> to vector<3x896xf32>
    %50 = arith.addf %48, %49 : vector<3x896xf32>
    %c0_28 = arith.constant 0 : index
    %c0_29 = arith.constant 0 : index
    %51 = vector.load %arg3[%c0_28, %c0_29] : memref<3x896xf32, #tpu.memory_space<vmem>>, vector<3x896xf32>
    tpu.vector_store %arg3[%c0_28, %c0_29], %50 {strides = array<i32>} : memref<3x896xf32, #tpu.memory_space<vmem>>, vector<3x896xf32>,
    return
  }
  func.func @transform_0(%arg0: i32) -> (i32, i32) {
    %c0_i32 = arith.constant 0 : i32
    %c0_i32_0 = arith.constant 0 : i32
    return %c0_i32, %arg0 : i32, i32
  }
  func.func @transform_1(%arg0: i32) -> (i32, i32) {
    %c0_i32 = arith.constant 0 : i32
    %c0_i32_0 = arith.constant 0 : i32
    %c0_i32_1 = arith.constant 0 : i32
    return %c0_i32, %c0_i32_0 : i32, i32
  }
  func.func @transform_2(%arg0: i32) -> (i32, i32) {
    %c0_i32 = arith.constant 0 : i32
    %c0_i32_0 = arith.constant 0 : i32
    return %c0_i32, %arg0 : i32, i32
  }
}

</mosaic_0001>

<bundles_post_ra>
// kernel: tpu_custom_call.1
= control target key start
LH: loop header
LB: loop body
LE: loop exit
PB: predicated region body
PF: predicated region fallthrough
CT: control target
= control target key end

     0   :  { %7 = vsyncpa [#allocation3], 0  ;;  %s3581_s0 = inlined_call_operand.hbm [shape: bf16[23,1792], index: 0, kind: input, shape index: {}]   ;;  %s3582_s1 = inlined_call_operand.hbm [shape: bf16[32,640], index: 1, kind: input, shape index: {}]   ;;  %s3583_s2 = inlined_call_operand.hbm [shape: f32[3,1792], index: 2, kind: output, shape index: {}]  }
   0x1   :  { %9 = vsyncpa [#allocation3 + $0x1], 0 }
   0x2   :  { %10 = vsyncpa [#allocation6], 0 }
   0x3   :  { %11 = vsyncpa [#allocation4], 0 }
   0x4   :  { %13 = vsyncpa [#allocation4 + $0x1], 0  ;;  %s3013_s9 = smov 0   ;;  %s3015_s10 = smov 0  }
   0x5   :  { %s3017_s11 = smov 0   ;;  %s3019_s12 = smov 0  }
   0x6 LB: > { %s3034_s13 = sadd.s32 4294967295, %s2978_s12   ;;  %s2424_s14 = sadd.s32 4294967294, %s2978_s12   ;;  %s2978_s12 = sphi %s3019_s12, %s3607_s12   ;;  %s2974_s11 = sphi %s3017_s11, %s3606_s11   ;;  %s2970_s10 = sphi %s3015_s10, %s3605_s10   ;;  %s2966_s9 = sphi %s3013_s9, %s3604_s9  }
   0x7   : > { %s3038_s15 = sadd.s32 1, %s2978_s12   ;;  %s26_s16 = sadd.s32 1, %s2974_s11 }
   0x8   : > { %s23_s17 = ssub.s32 %s2978_s12, %s3038_s15  ;;  %p33_p0 = scmp.ne.s32.totalorder %s2974_s11, %s2970_s10 }
   0x9   : > { %p24_p1 = scmp.eq.s32.totalorder %s23_s17, 0  ;;  %p34_p2 = scmp.eq.s32.totalorder %s2978_s12, 0 }
   0xa   : > { %p39_p3 = scmp.ne.s32.totalorder %s2970_s10, %s2966_s9  ;;  %p3584_p4 = scmp.eq.s32.totalorder %s3034_s13, 0 }
   0xb   : > { %s3050_s18 = scalar_select %p24_p1, %s2974_s11, %s26_s16  }
   0xc   : > { %p3052_p5 = por %p34_p2, %p33_p0  ;;  %p3058_p6 = por %p3584_p4, %p39_p3 }
   0xd   : > { %p84_p7 = scmp.eq.s32.totalorder %s3034_s13, 1  ;;  %p90_p8 = scmp.eq.s32.totalorder %s2424_s14, 1 }
   0xe   : > { %s3588_s19 = scalar_select %p3052_p5, 1, 0 }
   0xf   : > { %s3589_s20 = scalar_select %p3058_p6, 1, 0 }
  0x10   : > { %p2425_p9 = scmp.ge.s32.totalorder %s2978_s12, 1  ;;  %p97_p10 = scmp.lt.s32.totalorder %s2978_s12, 3 }
  0x11   : > { %p3065_p11 = por %p84_p7, %p33_p0  ;;  %p3069_p12 = por %p90_p8, %p39_p3 }
  0x12   : > { %p3073_p13 = pnand %p2425_p9, %p97_p10  ;;  %s2980_s24 = smov [#allocation5]  }
  0x13   : > { %s3590_s21 = scalar_select %p3065_p11, 1, 0 }
  0x14   : > { %s3591_s22 = scalar_select %p3069_p12, 1, 0 }
  0x15   : > { %s3592_s23 = scalar_select %p3073_p13, 1, 0 }
  0x16   : > { %p2711_p1 = pneg %p3073_p13  ;;  %s109_s25 = sshll.u32 %s2980_s24, 4  ;;  %s110_s25 = int_to_ptr.vmem [resolvable:$true] %s109_s25 }
  0x17   : > { %s123_s27 = sand.u32 1, %s2974_s11   ;;  %s2850_s30 = scalar_lea.hbm %s3582_s1, 1280 }
  0x18   : > { %p3081_p2 = pnand %p2711_p1, %p3584_p4  ;;  %p2851_p7 = scmp.ne.s32.totalorder %s3582_s1, %s2850_s30 }
  0x19   : > { %p2857_p1 = scmp.lt.u32.totalorder %s2850_s30, %s3582_s1 }
  0x1a   : > { %p2852_p8 = pneg %p3081_p2 }
  0x1c   : > { %p2853_p9 = pnand %p2852_p8, %p2851_p7 }
  0x1e   : > { %p2854_p10 = pneg %p2853_p9 }
  0x20   : > { %p2859_p4 = pnand %p2857_p1, %p2854_p10 }
  0x22   : > { %2862 = shalt.err (!%p2859_p4)
}
  0x23   : > { %s2863_s7 = scalar_lea.vmem %s110_s25, 1280  ;;  %p2871_p11 = scmp.lt.s32.totalorder %s110_s25, %s110_s25 }
  0x24   : > { %p2864_p0 = scmp.ne.s32.totalorder %s110_s25, %s2863_s7  ;;  %p2872_p6 = scmp.lt.s32.totalorder %s2863_s7, %s2863_s7 }
  0x26   : > { %p2866_p3 = pnand %p2864_p0, %p2852_p8  ;;  %p2873_p13 = por %p2872_p6, %p2871_p11 }
  0x28   : > { %p2867_p12 = pneg %p2866_p3 }
  0x2a   : > { %p2874_p5 = pnand %p2873_p13, %p2867_p12 }
  0x2c   : > { %2877 = shalt.err (!%p2874_p5)
}
  0x2d   : > { %s2981_s8 = smov 320   ;;  %s2982_s14 = smov 20  }
  0x2e   : > { %2714 = dma.hbm_to_vmem [thread:$0]  (!%p3081_p2), %s3582_s1, 1280, %s110_s25, [#allocation6], %s2981_s8, %s2981_s8, %s2982_s14  }
  0x2f   : > { %p3594_p4 = scmp.ne.s32.totalorder %s3588_s19, 0  ;;  %p3595_p7 = scmp.lt.s32.totalorder %s2978_s12, 2 }
  0x30   : > { %s2700_s28 = smul.u32 84, %s123_s27  ;;  %s3120_s26 = scalar_lea.sflag [#allocation3], %s123_s27 }
  0x31   : > { %p3108_p0 = pnand %p3595_p7, %p3594_p4  ;;  %s2511_s29 = smul.u32 448, %s2978_s12 }
  0x32   : > { %s127_s25 = scalar_lea.vmem [#allocation2], %s2700_s28  ;;  %s2883_s8 = scalar_lea.hbm %s3581_s0, 2688 }
  0x33   : > { %s3116_s4 = scalar_lea.hbm %s3581_s0, %s2511_s29  ;;  %s134_s19 = sshll.u32 %s127_s25, 4  ;;  %s3118_s19 = int_to_ptr.vmem [resolvable:$true] %s134_s19 }
  0x34   : > { %s2878_s5 = scalar_lea.hbm %s3116_s4, 1344  ;;  %p2880_p6 = pneg %p3108_p0 }
  0x35   : > { %p2879_p5 = scmp.ne.s32.totalorder %s3116_s4, %s2878_s5  ;;  %p2884_p13 = scmp.lt.u32.totalorder %s3116_s4, %s3581_s0 }
  0x36   : > { %p2885_p2 = scmp.lt.u32.totalorder %s2883_s8, %s2878_s5  ;;  %p2887_p8 = scmp.lt.u32.totalorder %s2878_s5, %s3116_s4 }
  0x37   : > { %p2881_p11 = pnand %p2880_p6, %p2879_p5 }
  0x38   : > { %p2886_p3 = por %p2885_p2, %p2884_p13 }
  0x39   : > { %p2882_p12 = pneg %p2881_p11 }
  0x3a   : > { %p2888_p9 = por %p2887_p8, %p2886_p3 }
  0x3c   : > { %p2889_p10 = pnand %p2888_p9, %p2882_p12 }
  0x3e   : > { %2892 = shalt.err (!%p2889_p10)
}
  0x3f   : > { %s2893_s27 = scalar_lea.vmem %s3118_s19, 1344  ;;  %s2983_s17 = smov [#allocation2]  }
  0x40   : > { %p2894_p1 = scmp.ne.s32.totalorder %s3118_s19, %s2893_s27  ;;  %s2898_s28 = sshll.u32 %s2983_s17, 4  ;;  %s2899_s28 = int_to_ptr.vmem [resolvable:$false] %s2898_s28 }
  0x41   : > { %s2900_s29 = scalar_lea.vmem %s2899_s28, 2688  ;;  %p2901_p5 = scmp.lt.s32.totalorder %s3118_s19, %s2899_s28 }
  0x42   : > { %p2896_p4 = pnand %p2894_p1, %p2880_p6  ;;  %p2902_p11 = scmp.lt.s32.totalorder %s2900_s29, %s2893_s27 }
  0x44   : > { %p2897_p7 = pneg %p2896_p4  ;;  %p2903_p13 = por %p2902_p11, %p2901_p5 }
  0x46   : > { %p2904_p2 = pnand %p2903_p13, %p2897_p7 }
  0x48   : > { %2907 = shalt.err (!%p2904_p2)
}
  0x49   : > { %s2984_s30 = smov 896   ;;  %s2985_s3 = smov 448  }
  0x4a   : > { %s2986_s25 = smov 28   ;;  %p3597_p6 = scmp.ne.s32.totalorder %s3592_s23, 0 }
  0x4b   : > { %2718 = dma.hbm_to_vmem [thread:$0]  (!%p3108_p0), %s3116_s4, 1344, %s3118_s19, %s3120_s26, %s2984_s30, %s2985_s3, %s2986_s25  }
  0x4c   : > { %146 = sbr.rel (%p3597_p6) target bundleno = 1308 (0x51c), region = 28  ;;  %s3151_s5 = sand.u32 (!%p3597_p6), 1, %s2970_s10  }
  0x4d   : > { %s2701_s6 = smul.u32 (!%p3597_p6), 84, %s3151_s5  ;;  %s149_s7 = scalar_lea.sflag (!%p3597_p6), [#allocation3], %s3151_s5 }
  0x4e   : > { %p3598_p12 = scmp.ne.s32.totalorder (!%p3597_p6), %s3589_s20, 0 }
  0x4f   : > { %s3155_s8 = scalar_lea.vmem (!%p3597_p6), [#allocation2], %s2701_s6 }
  0x53   : > { %2953 = dma.done.wait (%p3598_p12), %s149_s7, 1344  }
  0x54   : > { %2955 = vsyncadd (%p3598_p12), %s149_s7, 4294965952  ;;  %p3599_p0 = scmp.eq.s32.totalorder %s3034_s13, 0 }
  0x56   : > { %2957 = dma.done.wait (%p3599_p0), [#allocation6], 1280   ;;  %p3600_p3 = pmov %p3599_p0 }
  0x57   : > { %vm242_vm0 = vcmask 1046528   ;;  %v2987_v0 = vmov 0   ;;  %v2988_v1 = vmov 15   ;;  %vm243_vm1 = vcmask 1047552   ;;  %v2822_v5 = vld [vmem:[%s3155_s8 + $0x4] ss:$28 sps:$4 sm:$0xff]  }
  0x58   : > { %2959 = vsyncadd (%p3600_p3), [#allocation6], 4294966016  ;;  %299 = vmatprep.mubr.bf16.mxu0 %v2987_v0  ;;  %352 = vmatprep.mubr.bf16.mxu1 %v2987_v0  ;;  %v2989_v2 = vmov 65535   ;;  %v2824_v6 = vld [vmem:[%s3155_s8 + $0xc] ss:$28 sps:$4 sm:$0xff]   ;;  %vm235_vm2 = vcmask 121856  }
  0x59   : > { %2775 = vset.pattern.permute.xlu0 %v2988_v1  ;;  %v244_v3 = vsel %vm242_vm0, 4294967295, %v2989_v2  ;;  %v2826_v8 = vld [vmem:[%s3155_s8] ss:$28 sps:$4 sm:$0xff]   ;;  %v2827_v9 = vld [vmem:[%s3155_s8 + $0x8] ss:$28 sps:$4 sm:$0xff]   ;;  %s2990_s20 = smov 96  }
  0x5a   : > { %v245_v4 = vsel %vm243_vm1, %v244_v3, 0  ;;  %v180_v10 = vld [vmem:[#allocation5] sm:$0xf]  ;;  %v181_v12 = vld [vmem:[#allocation5 + $0x14] sm:$0xf]  ;;  %v2991_v40 = vmov 40  }
  0x5b   : > { %v3169_v7 = vand.u32 %v2822_v5, %v245_v4  ;;  %v3173_v11 = vand.u32 %v2824_v6, %v245_v4  ;;  %v3176_v13 = vand.u32 %v2826_v8, %v245_v4  ;;  %v3178_v14 = vand.u32 %v2827_v9, %v245_v4  ;;  %v2829_v15 = vld [vmem:[%s3155_s8 + $0x10] ss:$28 sps:$4 sm:$0xff]   ;;  %v2833_v22 = vld [vmem:[%s3155_s8 + $0x18] ss:$28 sps:$4 sm:$0xff]   ;;  %2792 = vset.pattern.permute.xlu1 %v2991_v40  ;;  %s2992_s23 = smov 113   ;;  %s2702_s24 = smul.u32 28, %s3151_s5 }
  0x5c   : > { %v2831_v16 = vld [vmem:[%s3155_s8 + $0x14] ss:$28 sps:$4 sm:$0xff]   ;;  %v184_v17 = vunpack.c.l.bf16 %v180_v10  ;;  %v185_v18 = vunpack.c.l.bf16 %v181_v12  ;;  %v2431_v19 = vcombine.low %v180_v10, %v181_v12  ;;  %v3187_v21 = vand.u32 %v2829_v15, %v245_v4  ;;  %v565_v23 = vld [vmem:[#allocation5 + $0x4] sm:$0xf]  ;;  %v566_v24 = vld [vmem:[#allocation5 + $0x18] sm:$0xf] }
  0x5d   : > { %267 = vmatprep.subr.bf16.mxu0 %v3169_v7  ;;  %320 = vmatprep.subr.bf16.mxu1 %v3173_v11  ;;  %v3185_v20 = vand.u32 %v2831_v16, %v245_v4  ;;  %v182_v25 = vld [vmem:[#allocation5 + $0x28] sm:$0xf]  ;;  %v183_v26 = vld [vmem:[#allocation5 + $0x3c] sm:$0xf]  ;;  %v3191_v27 = vand.u32 %v2833_v22, %v245_v4  ;;  %v3195_v31 = vcombine.low %v565_v23, %v566_v24  ;;  %v567_v33 = vld [vmem:[#allocation5 + $0x2c] sm:$0xf]  ;;  %v569_v37 = vunpack.c.l.bf16 %v565_v23 }
  0x5e   : > { %268 = vmatpush1.bf16.msra.mxu0 %v3176_v13  ;;  %321 = vmatpush1.bf16.msra.mxu1 %v3178_v14  ;;  %v2776_v28 = vpack.i.bf16 %v185_v18, %v184_v17  ;;  %v186_v29 = vunpack.c.l.bf16 %v182_v25  ;;  %v187_v30 = vunpack.c.l.bf16 %v183_v26  ;;  %v568_v34 = vld [vmem:[#allocation5 + $0x40] sm:$0xf]  ;;  %v2432_v35 = vcombine.low %v182_v25, %v183_v26  ;;  %v3216_v42 = vld [vmem:[#allocation5 + $0x30] sm:$0xf]  ;;  %v3218_v43 = vld [vmem:[#allocation5 + $0x44] sm:$0xf] }
  0x5f   : > { %373 = vmatprep.subr.bf16.mxu0 %v3185_v20  ;;  %2537 = vmatprep.subr.bf16.mxu1 %v3191_v27  ;;  %v3203_v36 = vcombine.low %v567_v33, %v568_v34  ;;  %v570_v38 = vunpack.c.l.bf16 %v566_v24  ;;  %v571_v39 = vunpack.c.l.bf16 %v567_v33  ;;  %v572_v41 = vunpack.c.l.bf16 %v568_v34  ;;  %v3220_v45 = vld [vmem:[#allocation5 + $0x8] sm:$0xf]  ;;  %v3222_v46 = vld [vmem:[#allocation5 + $0x1c] sm:$0xf]  ;;  %s176_s4 = scalar_lea.vmem [#allocation7], %s2702_s24  ;;  %s2512_s19 = smul.u32 448, %s3034_s13 }
  0x60   : > { %2777 = vperm.xlu0 %2775, %v2776_v28   ;;  %v2781_v32 = vpack.i.bf16 %v187_v30, %v186_v29  ;;  %854 = vrot.lane.b32.xlu1 %v3195_v31, %s2990_s20  ;;  %v3226_v48 = vcombine.low %v3216_v42, %v3218_v43  ;;  %v3230_v49 = vcombine.low %v3220_v45, %v3222_v46  ;;  %vm583_vm3 = vcmask 261120   ;;  %s2344_s26 = sshll.u32 %s176_s4, 4  ;;  %s2330_s17 = scalar_lea.sflag [#allocation4], %s3151_s5  ;;  %s3539_s26 = int_to_ptr.vmem [resolvable:$true] %s2344_s26 }
  0x61   : > { %2440 = vmatmul.mubr.msk.bf16.vlgmr.msra.gmra.mrb[0].mxu0 %vm235_vm2, %v2431_v19  ;;  %2442 = vmatmul.mubr.msk.bf16.vlgmr.msra.gmra.mrb[0].mxu1 %vm235_vm2, %v2431_v19  ;;  %v2787_v44 = vpack.i.bf16 %v570_v38, %v569_v37  ;;  %v2793_v47 = vpack.i.bf16 %v572_v41, %v571_v39  ;;  %vm950_vm4 = vcmask 1043456   ;;  %vm943_vm5 = vcmask 64512   ;;  %s3537_s27 = scalar_lea.hbm %s3583_s2, %s2512_s19  ;;  %s2908_s13 = scalar_lea.vmem %s3539_s26, 448 }
  0x62   : > { %374 = vmatpush1.bf16.msra.mxu0 %v3187_v21  ;;  %309 = vmatprep.mubr.bf16.mxu0 %v2987_v0  ;;  %vm2996_vm6 = vmmov 0   ;;  %p2909_p8 = scmp.ne.s32.totalorder %s3539_s26, %s2908_s13  ;;  %p3601_p9 = scmp.ne.s32.totalorder %s3590_s21, 0 }
  0x63   : > { %362 = vmatprep.mubr.bf16.mxu1 %v2987_v0  ;;  %2538 = vmatpush3.bf16.msra.mxu1 %v3191_v27  ;;  %s2997_s28 = smov [#allocation7]  }
  0x64   : > { %2782 = vperm.xlu0 %2775, %v2781_v32   ;;  %856 = vrot.lane.b32.xlu1 %v3203_v36, %s2990_s20  ;;  %p2910_p10 = pnand %p2909_p8, %p3601_p9  ;;  %s2912_s29 = sshll.u32 %s2997_s28, 4  ;;  %s2913_s29 = int_to_ptr.vmem [resolvable:$false] %s2912_s29 }
  0x65   : > { %s2914_s30 = scalar_lea.vmem %s2913_s29, 896  ;;  %p2915_p4 = scmp.lt.s32.totalorder %s3539_s26, %s2913_s29 }
  0x66   : > { %p2911_p1 = pneg %p2910_p10  ;;  %p2916_p7 = scmp.lt.s32.totalorder %s2914_s30, %s2908_s13 }
  0x68   : > { %2786 = vset.pattern.permute.xlu0 %v2991_v40  ;;  %2794 = vperm.xlu1 %2792, %v2793_v47   ;;  %p2917_p5 = por %p2916_p7, %p2915_p4 }
  0x69   : > { %2441 = vmatmul.mubr.msk.bf16.gmra.mrb[4].mxu0 %vm235_vm2, %v2432_v35  ;;  %2443 = vmatmul.mubr.msk.bf16.gmra.mrb[4].mxu1 %vm235_vm2, %v2432_v35 }
  0x6a   : > { %405 = vmatprep.mubr.bf16.mxu0 %v2987_v0  ;;  %2539 = vmatprep.mubr.msk.bf16.mxu1 %vm235_vm2, %v2431_v19  ;;  %p2918_p11 = pnand %p2917_p5, %p2911_p1 }
  0x6b   : > { %2788 = vperm.xlu0 %2786, %v2787_v44  }
  0x6c   : > { %1530 = vrot.lane.b32.xlu1 %v3230_v49, %s2992_s23 }
  0x6f   : > { %1532 = vrot.lane.b32.xlu0 %v3226_v48, %s2992_s23 }
  0x71   : > { %2444 = vmatmul.mubr.msk.bf16.vlgmr.msra.gmra.mrb[8].mxu0 %vm235_vm2, %v2431_v19  ;;  %2540 = vmatmul.mubr.msk.bf16.vlgmr.msra.gmra.mrb[8].mxu1 %vm235_vm2, %v2432_v35 }
  0x72   : > { %415 = vmatprep.mubr.bf16.mxu0 %v2987_v0  ;;  %622 = vmatprep.mubr.bf16.mxu1 %v2987_v0 }
  0x79   : > { %2445 = vmatmul.mubr.msk.bf16.gmra.mrb[12].mxu0 %vm235_vm2, %v2432_v35 }
  0x7a   : > { %675 = vmatprep.mubr.bf16.mxu0 %v2987_v0 }
  0xdf   : > { %v2778_v50 = vpop.permute.xlu0 %2777 }
  0xe0   : > { %v3234_v51 = vunpack.i.l.bf16 %v2778_v50  ;;  %v3236_v52 = vunpack.i.h.bf16 %v2778_v50  ;;  %v2838_v50 = vld [vmem:[%s3155_s8 + $0x28] ss:$28 sps:$4 sm:$0xf8]  }
  0xe3   : > { %v2783_v53 = vpop.permute.xlu0 %2782 }
  0xe4   : > { %v3246_v16 = vunpack.i.l.bf16 %v2783_v53  ;;  %v3248_v29 = vunpack.i.h.bf16 %v2783_v53 }
 0x134   : > { %v301_v54 = vpop.f32.mrb[0].mxu0  ;;  %v354_v55 = vpop.f32.mrb[0].mxu1 }
 0x135   : > { %v495_v56 = vadd.f32 %v3234_v51, %v301_v54  ;;  %v303_v57 = vpop.f32.mrb[1].mxu0  ;;  %v497_v58 = vadd.f32 %v3234_v51, %v354_v55  ;;  %v356_v59 = vpop.f32.mrb[1].mxu1  ;;  %v3260_v55 = vld [vmem:[%s3155_s8 + $0x24] ss:$28 sps:$4 sm:$0xf8]  }
 0x136   : > { %v496_v60 = vadd.f32 %v3234_v51, %v303_v57  ;;  %v305_v61 = vpop.f32.mrb[2].mxu0  ;;  %v498_v62 = vadd.f32 %v3234_v51, %v356_v59  ;;  %v358_v63 = vpop.f32.mrb[2].mxu1 }
 0x137   : > { %v502_v1 = vadd.f32 %v3236_v52, %v305_v61  ;;  %v307_v2 = vpop.f32.mrb[3].mxu0  ;;  %v525_v3 = vmax.f32 %v497_v58, 0.0  ;;  %v504_v4 = vadd.f32 %v3236_v52, %v358_v63  ;;  %v360_v5 = vpop.f32.mrb[3].mxu1  ;;  %v523_v10 = vmax.f32 %v495_v56, 0.0 }
 0x138   : > { %v503_v6 = vadd.f32 %v3236_v52, %v307_v2  ;;  %v526_v8 = vmax.f32 %v498_v62, 0.0  ;;  %v505_v9 = vadd.f32 %v3236_v52, %v360_v5  ;;  %v524_v17 = vmax.f32 %v496_v60, 0.0 }
 0x139   : > { %v530_v12 = vmax.f32 %v502_v1, 0.0  ;;  %v532_v15 = vmax.f32 %v504_v4, 0.0 }
 0x13a   : > { %v531_v18 = vmax.f32 %v503_v6, 0.0  ;;  %v533_v19 = vmax.f32 %v505_v9, 0.0  ;;  %v3263_v9 = vld [vmem:[%s3155_s8 + $0x20] ss:$28 sps:$4 sm:$0xf8]  }
 0x13b   : > { %v551_v22 = vpack.c.bf16 %v530_v12, %v523_v10  ;;  %v553_v23 = vpack.c.bf16 %v532_v15, %v525_v3  ;;  %v912_v3 = vshrl.u32 %v2838_v50, 16  ;;  %v915_v10 = vshll.u32 %v2838_v50, 16 }
 0x13c   : > { %v552_v24 = vpack.c.bf16 %v531_v18, %v524_v17  ;;  %v554_v25 = vpack.c.bf16 %v533_v19, %v526_v8  ;;  %v311_v26 = vpop.f32.mrb[4].mxu0  ;;  %v364_v28 = vpop.f32.mrb[4].mxu1 }
 0x13d   : > { %v509_v30 = vadd.f32 %v3246_v16, %v311_v26  ;;  %v511_v32 = vadd.f32 %v3246_v16, %v364_v28  ;;  %v313_v33 = vpop.f32.mrb[5].mxu0  ;;  %v366_v34 = vpop.f32.mrb[5].mxu1  ;;  %v907_v26 = vshll.u32 %v3260_v55, 16 }
 0x13e   : > { %v510_v35 = vadd.f32 %v3246_v16, %v313_v33  ;;  %v512_v37 = vadd.f32 %v3246_v16, %v366_v34  ;;  %v315_v38 = vpop.f32.mrb[6].mxu0  ;;  %v368_v39 = vpop.f32.mrb[6].mxu1  ;;  %590 = vmatprep.subr.bf16.mxu1 %v552_v24  ;;  %643 = vmatprep.subr.bf16.mxu0 %v554_v25  ;;  %v904_v25 = vshrl.u32 %v3260_v55, 16  ;;  %v3273_v34 = vrot.slane %v912_v3, 3 }
 0x13f   : > { %v516_v40 = vadd.f32 %v3248_v29, %v315_v38  ;;  %v518_v41 = vadd.f32 %v3248_v29, %v368_v39  ;;  %v317_v44 = vpop.f32.mrb[7].mxu0  ;;  %v370_v47 = vpop.f32.mrb[7].mxu1  ;;  %591 = vmatpush1.bf16.msra.mxu1 %v551_v22  ;;  %644 = vmatpush1.bf16.msra.mxu0 %v553_v23  ;;  %v537_v56 = vmax.f32 %v509_v30, 0.0  ;;  %v539_v57 = vmax.f32 %v511_v32, 0.0 }
 0x140   : > { %v517_v53 = vadd.f32 %v3248_v29, %v317_v44  ;;  %v519_v54 = vadd.f32 %v3248_v29, %v370_v47  ;;  %v538_v60 = vmax.f32 %v510_v35, 0.0  ;;  %v540_v61 = vmax.f32 %v512_v37, 0.0  ;;  %v2840_v35 = vld [vmem:[%s3155_s8 + $0x1c] ss:$28 sps:$4 sm:$0xf8]  }
 0x141   : > { %v544_v58 = vmax.f32 %v516_v40, 0.0  ;;  %v546_v59 = vmax.f32 %v518_v41, 0.0  ;;  %v896_v38 = vshrl.u32 %v3263_v9, 16  ;;  %v917_v39 = vrot.slane %v915_v10, 4 }
 0x142   : > { %v545_v62 = vmax.f32 %v517_v53, 0.0  ;;  %v547_v63 = vmax.f32 %v519_v54, 0.0  ;;  %v2842_v3 = vld [vmem:[%s3155_s8 + $0x30] ss:$28 sps:$4 sm:$0xf8]  }
 0x143   : > { %v558_v1 = vpack.c.bf16 %v544_v58, %v537_v56  ;;  %v560_v2 = vpack.c.bf16 %v546_v59, %v539_v57  ;;  %v899_v57 = vshll.u32 %v3263_v9, 16  ;;  %v888_v58 = vshrl.u32 %v2840_v35, 16 }
 0x144   : > { %v559_v4 = vpack.c.bf16 %v545_v62, %v538_v60  ;;  %v561_v5 = vpack.c.bf16 %v547_v63, %v540_v61  ;;  %v407_v6 = vpop.f32.mrb[8].mxu0  ;;  %v2541_v8 = vpop.f32.mrb[8].mxu1  ;;  %v891_v62 = vshll.u32 %v2840_v35, 16  ;;  %v2844_v63 = vld [vmem:[%s3155_s8 + $0x34] ss:$28 sps:$4 sm:$0xf8]  }
 0x145   : > { %v499_v12 = vadd.f32 %v3234_v51, %v407_v6  ;;  %v515_v15 = vadd.f32 %v3246_v16, %v2541_v8  ;;  %v409_v17 = vpop.f32.mrb[9].mxu0  ;;  %v460_v18 = vpop.f32.mrb[9].mxu1  ;;  %v918_v6 = vor.u32 %v917_v39, %v3273_v34  ;;  %v906_v8 = vrot.slane %v904_v25, 3 }
 0x146   : > { %v500_v19 = vadd.f32 %v3234_v51, %v409_v17  ;;  %v501_v22 = vadd.f32 %v3234_v51, %v460_v18  ;;  %v411_v23 = vpop.f32.mrb[10].mxu0  ;;  %v2542_v24 = vpop.f32.mrb[10].mxu1  ;;  %592 = vmatprep.subr.bf16.mxu1 %v559_v4  ;;  %645 = vmatprep.subr.bf16.mxu0 %v561_v5  ;;  %v909_v9 = vrot.slane %v907_v26, 4  ;;  %v901_v17 = vrot.slane %v899_v57, 4 }
 0x147   : > { %v506_v28 = vadd.f32 %v3236_v52, %v411_v23  ;;  %v522_v30 = vadd.f32 %v3248_v29, %v2542_v24  ;;  %v413_v32 = vpop.f32.mrb[11].mxu0  ;;  %v463_v33 = vpop.f32.mrb[11].mxu1  ;;  %593 = vmatpush1.bf16.msra.mxu1 %v558_v1  ;;  %646 = vmatpush1.bf16.msra.mxu0 %v560_v2  ;;  %v527_v40 = vmax.f32 %v499_v12, 0.0  ;;  %v543_v41 = vmax.f32 %v515_v15, 0.0 }
 0x148   : > { %v507_v51 = vadd.f32 %v3236_v52, %v413_v32  ;;  %v508_v37 = vadd.f32 %v3236_v52, %v463_v33  ;;  %v528_v50 = vmax.f32 %v500_v19, 0.0  ;;  %v529_v53 = vmax.f32 %v501_v22, 0.0 }
 0x149   : > { %v534_v44 = vmax.f32 %v506_v28, 0.0  ;;  %v550_v47 = vmax.f32 %v522_v30, 0.0  ;;  %v898_v15 = vrot.slane %v896_v38, 3  ;;  %v890_v18 = vrot.slane %v888_v58, 3 }
 0x14a   : > { %v535_v54 = vmax.f32 %v507_v51, 0.0  ;;  %v536_v55 = vmax.f32 %v508_v37, 0.0  ;;  %2450 = vmatmul.mubr.msk.bf16.vlgmr.msra.gmra.mrb[12].mxu1 %vm583_vm3, %v3195_v31  ;;  %2452 = vmatmul.mubr.msk.bf16.vlgmr.msra.gmra.mrb[16].mxu0 %vm583_vm3, %v3195_v31  ;;  %v893_v22 = vrot.slane %v891_v62, 4  ;;  %v939_v23 = vshll.u32 %v2844_v63, 16 }
 0x14b   : > { %v555_v52 = vpack.c.bf16 %v534_v44, %v527_v40  ;;  %v564_v56 = vpack.c.bf16 %v550_v47, %v543_v41  ;;  %632 = vmatprep.mubr.bf16.mxu1 %v2987_v0  ;;  %685 = vmatprep.mubr.bf16.mxu0 %v2987_v0  ;;  %v928_v30 = vshrl.u32 %v2842_v3, 16  ;;  %v931_v32 = vshll.u32 %v2842_v3, 16  ;;  %v2845_v47 = vld [vmem:[%s3155_s8 + $0x2c] ss:$28 sps:$4 sm:$0xf8]  }
 0x14c   : > { %v556_v59 = vpack.c.bf16 %v535_v54, %v528_v50  ;;  %v557_v60 = vpack.c.bf16 %v536_v55, %v529_v53  ;;  %v417_v61 = vpop.f32.mrb[12].mxu0  ;;  %v902_v35 = vor.u32 %v901_v17, %v898_v15  ;;  %v894_v51 = vor.u32 %v893_v22, %v890_v18 }
 0x14d   : > { %v513_v1 = vadd.f32 %v3246_v16, %v417_v61  ;;  %v419_v2 = vpop.f32.mrb[13].mxu0  ;;  %v930_v37 = vrot.slane %v928_v30, 3  ;;  %v933_v38 = vrot.slane %v931_v32, 4  ;;  %v941_v40 = vrot.slane %v939_v23, 4 }
 0x14e   : > { %v514_v4 = vadd.f32 %v3246_v16, %v419_v2  ;;  %v421_v5 = vpop.f32.mrb[14].mxu0  ;;  %696 = vmatprep.subr.bf16.mxu1 %v556_v59  ;;  %2543 = vmatprep.subr.bf16.mxu0 %v557_v60  ;;  %v936_v16 = vshrl.u32 %v2844_v63, 16  ;;  %v952_v41 = vsel %vm950_vm4, %v894_v51, 0  ;;  %v920_v54 = vshrl.u32 %v2845_v47, 16 }
 0x14f   : > { %v520_v10 = vadd.f32 %v3248_v29, %v421_v5  ;;  %v423_v12 = vpop.f32.mrb[15].mxu0  ;;  %697 = vmatpush1.bf16.msra.mxu1 %v555_v52  ;;  %2544 = vmatpush3.bf16.msra.mxu0 %v557_v60  ;;  %v541_v24 = vmax.f32 %v513_v1, 0.0  ;;  %v934_v50 = vor.u32 %v933_v38, %v930_v37  ;;  %v923_v55 = vshll.u32 %v2845_v47, 16  ;;  %v855_v52 = vpop.permute.xlu1 %854 }
 0x150   : > { %v521_v19 = vadd.f32 %v3248_v29, %v423_v12  ;;  %2545 = vmatprep.subr.bf16.mxu0 %v564_v56  ;;  %v542_v25 = vmax.f32 %v514_v4, 0.0  ;;  %v910_v29 = vor.u32 %v909_v9, %v906_v8  ;;  %v938_v39 = vrot.slane %v936_v16, 3 }
 0x151   : > { %v548_v28 = vmax.f32 %v520_v10, 0.0  ;;  %v925_v57 = vrot.slane %v923_v55, 4 }
 0x152   : > { %v549_v26 = vmax.f32 %v521_v19, 0.0  ;;  %2451 = vmatmul.mubr.msk.bf16.gmra.mrb[16].mxu1 %vm583_vm3, %v3203_v36  ;;  %2453 = vmatmul.mubr.msk.bf16.gmra.mrb[20].mxu0 %vm583_vm3, %v3203_v36  ;;  %v958_v44 = vsel %vm950_vm4, %v910_v29, 0  ;;  %v942_v53 = vor.u32 %v941_v40, %v938_v39 }
 0x153   : > { %v562_v33 = vpack.c.bf16 %v548_v28, %v541_v24  ;;  %2546 = vmatpush3.bf16.msra.mxu0 %v564_v56  ;;  %728 = vmatprep.mubr.bf16.mxu1 %v2987_v0  ;;  %v922_v56 = vrot.slane %v920_v54, 3  ;;  %v857_v59 = vpop.permute.xlu1 %856 }
 0x154   : > { %v563_v34 = vpack.c.bf16 %v549_v26, %v542_v25  ;;  %2547 = vmatprep.mubr.msk.bf16.mxu0 %vm583_vm3, %v3195_v31  ;;  %2468 = vmatprep.subr.msk.bf16.mxu0 %vm950_vm4, %v918_v6 }
 0x155   : > { %v926_v58 = vor.u32 %v925_v57, %v922_v56 }
 0x156   : > { %698 = vmatprep.subr.bf16.mxu1 %v563_v34 }
 0x157   : > { %699 = vmatpush1.bf16.msra.mxu1 %v562_v33  ;;  %v964_v60 = vsel %vm950_vm4, %v926_v58, 0  ;;  %v2795_v63 = vpop.permute.xlu1 %2794 }
 0x158   : > { %2465 = vmatprep.subr.msk.bf16.mxu1 %vm950_vm4, %v902_v35  ;;  %v3374_v5 = vunpack.i.l.bf16 %v2795_v63  ;;  %v3376_v10 = vunpack.i.h.bf16 %v2795_v63 }
 0x15a   : > { %2454 = vmatmul.mubr.msk.bf16.vlgmr.msra.gmra.mrb[20].mxu1 %vm583_vm3, %v3195_v31  ;;  %2548 = vmatmul.mubr.msk.bf16.vlgmr.msra.gmra.mrb[24].mxu0 %vm583_vm3, %v3203_v36  ;;  %v970_v31 = vsel %vm950_vm4, %v942_v53, 0 }
 0x15b   : > { %973 = vmatpush1.bf16.msra.mxu1 %v952_v41  ;;  %1026 = vmatpush1.bf16.msra.mxu0 %v958_v44 }
 0x15c   : > { %738 = vmatprep.mubr.bf16.mxu1 %v2987_v0  ;;  %1057 = vmatprep.mubr.bf16.mxu0 %v2987_v0 }
 0x15d   : > { %2471 = vmatprep.subr.msk.bf16.mxu1 %vm950_vm4, %v934_v50  ;;  %2699 = vmatprep.subr.msk.bf16.mxu0 %vm950_vm4, %v942_v53  ;;  %v3386_v53 = vpop.permute.xlu1 %1530 }
 0x162   : > { %2455 = vmatmul.mubr.msk.bf16.gmra.mrb[24].mxu1 %vm583_vm3, %v3203_v36  ;;  %2469 = vmatmul.mubr.msk.bf16.vlgmr.msra.gmra.mrb[16].mxu0 %vm943_vm5, %v855_v52  ;;  %v2789_v36 = vpop.permute.xlu0 %2788 }
 0x163   : > { %1004 = vmatprep.mubr.bf16.mxu1 %v2987_v0  ;;  %1067 = vmatprep.mubr.bf16.mxu0 %v2987_v0 }
 0x164   : > { %2552 = vmatpush3.bf16.msra.mxu0 %v970_v31 }
 0x165   : > { %1274 = vmatprep.subr.bf16.mxu0 %v3169_v7  ;;  %v1254_v7 = vunpack.c.l.bf16 %v3220_v45 }
 0x16a   : > { %2466 = vmatmul.mubr.msk.bf16.vlgmr.msra.gmra.mrb[12].mxu1 %vm943_vm5, %v855_v52  ;;  %2470 = vmatmul.mubr.msk.bf16.gmra.mrb[20].mxu0 %vm943_vm5, %v857_v59 }
 0x16b   : > { %2553 = vmatprep.mubr.msk.bf16.mxu0 %vm943_vm5, %v855_v52  ;;  %1079 = vmatpush1.bf16.msra.mxu1 %v964_v60 }
 0x16c   : > { %1014 = vmatprep.mubr.bf16.mxu1 %v2987_v0  ;;  %1327 = vmatprep.subr.bf16.mxu1 %v3173_v11  ;;  %v1255_v11 = vunpack.c.l.bf16 %v3222_v46 }
 0x172   : > { %2467 = vmatmul.mubr.msk.bf16.gmra.mrb[16].mxu1 %vm943_vm5, %v857_v59  ;;  %2554 = vmatmul.mubr.msk.bf16.vlgmr.msra.gmra.mrb[24].mxu0 %vm943_vm5, %v857_v59 }
 0x173   : > { %1110 = vmatprep.mubr.bf16.mxu1 %v2987_v0  ;;  %1275 = vmatpush1.bf16.msra.mxu0 %v3176_v13  ;;  %v1256_v13 = vunpack.c.l.bf16 %v3216_v42 }
 0x174   : > { %1306 = vmatprep.mubr.bf16.mxu0 %v2987_v0  ;;  %1380 = vmatprep.subr.bf16.mxu0 %v3185_v20  ;;  %v1257_v20 = vunpack.c.l.bf16 %v3218_v43 }
 0x17a   : > { %2472 = vmatmul.mubr.msk.bf16.vlgmr.msra.gmra.mrb[20].mxu1 %vm943_vm5, %v855_v52  ;;  %2478 = vmatmul.mubr.msk.bf16.vlgmr.msra.gmra.mrb[28].mxu0 %vm235_vm2, %v3230_v49 }
 0x17b   : > { %1120 = vmatprep.mubr.bf16.mxu1 %v2987_v0  ;;  %1328 = vmatpush1.bf16.msra.mxu1 %v3178_v14  ;;  %v2993_v14 = vmov 47  }
 0x17c   : > { %1381 = vmatpush1.bf16.msra.mxu0 %v3187_v21  ;;  %1316 = vmatprep.mubr.bf16.mxu0 %v2987_v0  ;;  %v2799_v21 = vpack.i.bf16 %v1255_v11, %v1254_v7 }
 0x17d   : > { %2557 = vmatprep.subr.bf16.mxu1 %v3191_v27  ;;  %2798 = vset.pattern.permute.xlu1 %v2993_v14 }
 0x17e   : > { %2804 = vset.pattern.permute.xlu0 %v2993_v14  ;;  %2800 = vperm.xlu1 %2798, %v2799_v21  }
 0x182   : > { %2473 = vmatmul.mubr.msk.bf16.gmra.mrb[24].mxu1 %vm943_vm5, %v857_v59  ;;  %2479 = vmatmul.mubr.msk.bf16.gmra.mrb[32].mxu0 %vm235_vm2, %v3226_v48 }
 0x183   : > { %1359 = vmatprep.mubr.bf16.mxu1 %v2987_v0  ;;  %1412 = vmatprep.mubr.bf16.mxu0 %v2987_v0 }
 0x18a   : > { %2480 = vmatmul.mubr.msk.bf16.vlgmr.msra.gmra.mrb[28].mxu1 %vm235_vm2, %v3230_v49  ;;  %2482 = vmatmul.mubr.msk.bf16.vlgmr.msra.gmra.mrb[36].mxu0 %vm235_vm2, %v3230_v49 }
 0x18b   : > { %1369 = vmatprep.mubr.bf16.mxu1 %v2987_v0  ;;  %2558 = vmatpush3.bf16.msra.mxu1 %v3191_v27  ;;  %v2805_v27 = vpack.i.bf16 %v1257_v20, %v1256_v13 }
 0x18c   : > { %1422 = vmatprep.mubr.bf16.mxu0 %v2987_v0 }
 0x18d   : > { %2806 = vperm.xlu0 %2804, %v2805_v27  }
 0x192   : > { %2481 = vmatmul.mubr.msk.bf16.gmra.mrb[32].mxu1 %vm235_vm2, %v3226_v48  ;;  %2483 = vmatmul.mubr.msk.bf16.gmra.mrb[40].mxu0 %vm235_vm2, %v3226_v48 }
 0x193   : > { %2559 = vmatprep.mubr.msk.bf16.mxu1 %vm235_vm2, %v3230_v49  ;;  %1572 = vmatprep.mubr.bf16.mxu0 %v2987_v0  ;;  %v3366_v49 = vunpack.i.l.bf16 %v2789_v36 }
 0x19a   : > { %2560 = vmatmul.mubr.msk.bf16.vlgmr.msra.gmra.mrb[36].mxu1 %vm235_vm2, %v3226_v48  ;;  %v3368_v48 = vunpack.i.h.bf16 %v2789_v36 }
 0x19b   : > { %1625 = vmatprep.mubr.bf16.mxu1 %v2987_v0 }
 0x235   : > { %v1059_v61 = vpop.f32.mrb[16].mxu0 }
 0x236   : > { %v2595_v45 = vadd.f32 %v3366_v49, %v1059_v61  ;;  %v1061_v46 = vpop.f32.mrb[17].mxu0 }
 0x237   : > { %v2596_v42 = vadd.f32 %v3366_v49, %v1061_v46  ;;  %v1063_v62 = vpop.f32.mrb[18].mxu0 }
 0x238   : > { %v2597_v1 = vadd.f32 %v3368_v48, %v1063_v62  ;;  %v1065_v43 = vpop.f32.mrb[19].mxu0  ;;  %v1210_v3 = vmax.f32 %v2595_v45, 0.0 }
 0x239   : > { %v2598_v2 = vadd.f32 %v3368_v48, %v1065_v43  ;;  %v1211_v6 = vmax.f32 %v2596_v42, 0.0 }
 0x23a   : > { %v1217_v4 = vmax.f32 %v2597_v1, 0.0 }
 0x23b   : > { %v1218_v8 = vmax.f32 %v2598_v2, 0.0 }
 0x23c   : > { %v1238_v9 = vpack.c.bf16 %v1217_v4, %v1210_v3 }
 0x23d   : > { %v1239_v12 = vpack.c.bf16 %v1218_v8, %v1211_v6  ;;  %v1006_v15 = vpop.f32.mrb[12].mxu1  ;;  %v1069_v17 = vpop.f32.mrb[20].mxu0 }
 0x23e   : > { %v2587_v18 = vadd.f32 %v3366_v49, %v1006_v15  ;;  %v2599_v19 = vadd.f32 %v3374_v5, %v1069_v17  ;;  %v1008_v22 = vpop.f32.mrb[13].mxu1  ;;  %v1071_v16 = vpop.f32.mrb[21].mxu0 }
 0x23f   : > { %v2588_v23 = vadd.f32 %v3366_v49, %v1008_v22  ;;  %v2600_v24 = vadd.f32 %v3374_v5, %v1071_v16  ;;  %v1010_v28 = vpop.f32.mrb[14].mxu1  ;;  %v1073_v30 = vpop.f32.mrb[22].mxu0  ;;  %1593 = vmatprep.subr.bf16.mxu1 %v1239_v12 }
 0x240   : > { %v2589_v32 = vadd.f32 %v3368_v48, %v1010_v28  ;;  %v2601_v25 = vadd.f32 %v3376_v10, %v1073_v30  ;;  %v1012_v26 = vpop.f32.mrb[15].mxu1  ;;  %v1075_v33 = vpop.f32.mrb[23].mxu0  ;;  %1594 = vmatpush1.bf16.msra.mxu1 %v1238_v9  ;;  %v1208_v35 = vmax.f32 %v2587_v18, 0.0  ;;  %v1224_v51 = vmax.f32 %v2599_v19, 0.0 }
 0x241   : > { %v2590_v29 = vadd.f32 %v3368_v48, %v1012_v26  ;;  %v2602_v34 = vadd.f32 %v3376_v10, %v1075_v33  ;;  %v1209_v39 = vmax.f32 %v2588_v23, 0.0  ;;  %v1225_v40 = vmax.f32 %v2600_v24, 0.0  ;;  %v1533_v16 = vpop.permute.xlu0 %1532 }
 0x242   : > { %v1215_v37 = vmax.f32 %v2589_v32, 0.0  ;;  %v1231_v38 = vmax.f32 %v2601_v25, 0.0 }
 0x243   : > { %v1216_v41 = vmax.f32 %v2590_v29, 0.0  ;;  %v1232_v44 = vmax.f32 %v2602_v34, 0.0 }
 0x244   : > { %v1236_v47 = vpack.c.bf16 %v1215_v37, %v1208_v35  ;;  %v1245_v50 = vpack.c.bf16 %v1231_v38, %v1224_v51 }
 0x245   : > { %v1237_v54 = vpack.c.bf16 %v1216_v41, %v1209_v39  ;;  %v1246_v55 = vpack.c.bf16 %v1232_v44, %v1225_v40  ;;  %v1016_v52 = vpop.f32.mrb[16].mxu1  ;;  %v2555_v56 = vpop.f32.mrb[24].mxu0 }
 0x246   : > { %v2591_v57 = vadd.f32 %v3374_v5, %v1016_v52  ;;  %v2611_v31 = vadd.f32 %v3374_v5, %v2555_v56  ;;  %v1018_v58 = vpop.f32.mrb[17].mxu1  ;;  %v1165_v59 = vpop.f32.mrb[25].mxu0 }
 0x247   : > { %v2592_v60 = vadd.f32 %v3374_v5, %v1018_v58  ;;  %v2612_v7 = vadd.f32 %v3366_v49, %v1165_v59  ;;  %v1020_v11 = vpop.f32.mrb[18].mxu1  ;;  %v2556_v13 = vpop.f32.mrb[26].mxu0  ;;  %1540 = vmatprep.subr.bf16.mxu0 %v1237_v54  ;;  %1595 = vmatprep.subr.bf16.mxu1 %v1246_v55  ;;  %v1820_v54 = vld [vmem:[#allocation5 + $0x34] sm:$0xf]  ;;  %v1821_v55 = vld [vmem:[#allocation5 + $0x48] sm:$0xf] }
 0x248   : > { %v2593_v14 = vadd.f32 %v3376_v10, %v1020_v11  ;;  %v2613_v20 = vadd.f32 %v3376_v10, %v2556_v13  ;;  %v1022_v21 = vpop.f32.mrb[19].mxu1  ;;  %v1168_v27 = vpop.f32.mrb[27].mxu0  ;;  %1541 = vmatpush1.bf16.msra.mxu0 %v1236_v47  ;;  %1596 = vmatpush1.bf16.msra.mxu1 %v1245_v50  ;;  %v1222_v45 = vmax.f32 %v2591_v57, 0.0  ;;  %v1228_v46 = vmax.f32 %v2611_v31, 0.0  ;;  %v1819_v47 = vld [vmem:[#allocation5 + $0x20] sm:$0xf] }
 0x249   : > { %v2594_v36 = vadd.f32 %v3376_v10, %v1022_v21  ;;  %v2614_v61 = vadd.f32 %v3368_v48, %v1168_v27  ;;  %v1223_v63 = vmax.f32 %v2592_v60, 0.0  ;;  %v1214_v1 = vmax.f32 %v2612_v7, 0.0  ;;  %v2801_v7 = vpop.permute.xlu1 %2800 }
 0x24a   : > { %v1229_v42 = vmax.f32 %v2593_v14, 0.0  ;;  %v1235_v62 = vmax.f32 %v2613_v20, 0.0  ;;  %v3424_v52 = vcombine.low %v1820_v54, %v1821_v55  ;;  %v1823_v57 = vunpack.c.l.bf16 %v1819_v47 }
 0x24b   : > { %v1230_v43 = vmax.f32 %v2594_v36, 0.0  ;;  %v1221_v2 = vmax.f32 %v2614_v61, 0.0  ;;  %2488 = vmatmul.mubr.msk.bf16.vlgmr.msra.gmra.mrb[28].mxu1 %vm583_vm3, %v3386_v53  ;;  %v1824_v31 = vunpack.c.l.bf16 %v1820_v54  ;;  %v2994_v58 = vmov 32   ;;  %v2807_v61 = vpop.permute.xlu0 %2806 }
 0x24c   : > { %v1243_v3 = vpack.c.bf16 %v1229_v42, %v1222_v45  ;;  %v1249_v4 = vpack.c.bf16 %v1235_v62, %v1228_v46  ;;  %1635 = vmatprep.mubr.bf16.mxu1 %v2987_v0  ;;  %2810 = vset.pattern.permute.xlu1 %v2994_v58  ;;  %v3426_v11 = vunpack.i.l.bf16 %v2801_v7  ;;  %v3428_v13 = vunpack.i.h.bf16 %v2801_v7 }
 0x24d   : > { %v1244_v6 = vpack.c.bf16 %v1230_v43, %v1223_v63  ;;  %v1242_v8 = vpack.c.bf16 %v1221_v2, %v1214_v1  ;;  %v1112_v9 = vpop.f32.mrb[20].mxu1  ;;  %2821 = vset.pattern.permute.xlu0 %v2994_v58  ;;  %v3434_v1 = vunpack.i.l.bf16 %v2807_v61 }
 0x24e   : > { %v2603_v12 = vadd.f32 %v3366_v49, %v1112_v9  ;;  %v1114_v15 = vpop.f32.mrb[21].mxu1 }
 0x24f   : > { %v2604_v17 = vadd.f32 %v3366_v49, %v1114_v15  ;;  %v1116_v18 = vpop.f32.mrb[22].mxu1  ;;  %1542 = vmatprep.subr.bf16.mxu0 %v1244_v6  ;;  %2563 = vmatprep.subr.bf16.mxu1 %v1242_v8 }
 0x250   : > { %v2605_v19 = vadd.f32 %v3368_v48, %v1116_v18  ;;  %v1118_v22 = vpop.f32.mrb[23].mxu1  ;;  %1543 = vmatpush1.bf16.msra.mxu0 %v1243_v3  ;;  %2564 = vmatpush3.bf16.msra.mxu1 %v1242_v8  ;;  %v1212_v24 = vmax.f32 %v2603_v12, 0.0 }
 0x251   : > { %v2606_v23 = vadd.f32 %v3368_v48, %v1118_v22  ;;  %2565 = vmatprep.subr.bf16.mxu1 %v1249_v4  ;;  %v1213_v30 = vmax.f32 %v2604_v17, 0.0 }
 0x252   : > { %v1219_v28 = vmax.f32 %v2605_v19, 0.0 }
 0x253   : > { %v1220_v32 = vmax.f32 %v2606_v23, 0.0  ;;  %2486 = vmatmul.mubr.msk.bf16.vlgmr.msra.gmra.mrb[28].mxu0 %vm583_vm3, %v3386_v53  ;;  %2489 = vmatmul.mubr.msk.bf16.gmra.mrb[32].mxu1 %vm583_vm3, %v1533_v16 }
 0x254   : > { %v1240_v49 = vpack.c.bf16 %v1219_v28, %v1212_v24  ;;  %2566 = vmatpush3.bf16.msra.mxu1 %v1249_v4  ;;  %2567 = vmatprep.mubr.msk.bf16.mxu1 %vm583_vm3, %v3386_v53  ;;  %v3436_v4 = vunpack.i.h.bf16 %v2807_v61 }
 0x255   : > { %v1241_v25 = vpack.c.bf16 %v1220_v32, %v1213_v30  ;;  %v1122_v26 = vpop.f32.mrb[24].mxu1  ;;  %1582 = vmatprep.mubr.bf16.mxu0 %v2987_v0 }
 0x256   : > { %v2607_v48 = vadd.f32 %v3374_v5, %v1122_v26  ;;  %v1124_v33 = vpop.f32.mrb[25].mxu1 }
 0x257   : > { %v2608_v29 = vadd.f32 %v3374_v5, %v1124_v33  ;;  %v1126_v34 = vpop.f32.mrb[26].mxu1  ;;  %1646 = vmatprep.subr.bf16.mxu0 %v1241_v25 }
 0x258   : > { %v2609_v35 = vadd.f32 %v3376_v10, %v1126_v34  ;;  %v1128_v51 = vpop.f32.mrb[27].mxu1  ;;  %1647 = vmatpush1.bf16.msra.mxu0 %v1240_v49  ;;  %v1226_v38 = vmax.f32 %v2607_v48, 0.0 }
 0x259   : > { %v2610_v37 = vadd.f32 %v3376_v10, %v1128_v51  ;;  %v1227_v40 = vmax.f32 %v2608_v29, 0.0  ;;  %v1818_v10 = vld [vmem:[#allocation5 + $0xc] sm:$0xf] }
 0x25a   : > { %v1233_v39 = vmax.f32 %v2609_v35, 0.0  ;;  %v3422_v50 = vcombine.low %v1818_v10, %v1819_v47  ;;  %v1822_v56 = vunpack.c.l.bf16 %v1818_v10 }
 0x25b   : > { %v1234_v41 = vmax.f32 %v2610_v37, 0.0  ;;  %2487 = vmatmul.mubr.msk.bf16.gmra.mrb[32].mxu0 %vm583_vm3, %v1533_v16  ;;  %2568 = vmatmul.mubr.msk.bf16.vlgmr.msra.gmra.mrb[36].mxu1 %vm583_vm3, %v1533_v16 }
 0x25c   : > { %v1247_v44 = vpack.c.bf16 %v1233_v39, %v1226_v38  ;;  %1678 = vmatprep.mubr.bf16.mxu0 %v2987_v0  ;;  %1874 = vmatprep.mubr.bf16.mxu1 %v2987_v0  ;;  %v2811_v59 = vpack.i.bf16 %v1823_v57, %v1822_v56 }
 0x25d   : > { %v1248_v5 = vpack.c.bf16 %v1234_v41, %v1227_v40 }
 0x25e   : > { %2812 = vperm.xlu1 %2810, %v2811_v59  }
 0x25f   : > { %1648 = vmatprep.subr.bf16.mxu0 %v1248_v5 }
 0x260   : > { %1649 = vmatpush1.bf16.msra.mxu0 %v1247_v44 }
 0x263   : > { %2490 = vmatmul.mubr.msk.bf16.vlgmr.msra.gmra.mrb[36].mxu0 %vm583_vm3, %v3386_v53  ;;  %v1825_v53 = vunpack.c.l.bf16 %v1821_v55 }
 0x264   : > { %1688 = vmatprep.mubr.bf16.mxu0 %v2987_v0 }
 0x265   : > { %v2816_v60 = vpack.i.bf16 %v1825_v53, %v1824_v31 }
 0x267   : > { %2817 = vperm.xlu1 %2810, %v2816_v60  }
 0x26b   : > { %2491 = vmatmul.mubr.msk.bf16.gmra.mrb[40].mxu0 %vm583_vm3, %v1533_v16 }
 0x26c   : > { %1927 = vmatprep.mubr.bf16.mxu0 %v2987_v0 }
 0x31e   : > { %v1627_v14 = vpop.f32.mrb[28].mxu1 }
 0x31f   : > { %v2623_v20 = vadd.f32 %v3426_v11, %v1627_v14  ;;  %v1629_v21 = vpop.f32.mrb[29].mxu1 }
 0x320   : > { %v2624_v27 = vadd.f32 %v3426_v11, %v1629_v21  ;;  %v1631_v36 = vpop.f32.mrb[30].mxu1 }
 0x321   : > { %v2625_v45 = vadd.f32 %v3428_v13, %v1631_v36  ;;  %v1633_v46 = vpop.f32.mrb[31].mxu1  ;;  %v1778_v62 = vmax.f32 %v2623_v20, 0.0 }
 0x322   : > { %v2626_v42 = vadd.f32 %v3428_v13, %v1633_v46  ;;  %v1779_v43 = vmax.f32 %v2624_v27, 0.0 }
 0x323   : > { %v1785_v63 = vmax.f32 %v2625_v45, 0.0 }
 0x324   : > { %v1786_v2 = vmax.f32 %v2626_v42, 0.0 }
 0x325   : > { %v1806_v3 = vpack.c.bf16 %v1785_v63, %v1778_v62 }
 0x326   : > { %v1807_v6 = vpack.c.bf16 %v1786_v2, %v1779_v43  ;;  %v1574_v8 = vpop.f32.mrb[28].mxu0  ;;  %v1637_v9 = vpop.f32.mrb[32].mxu1 }
 0x327   : > { %v2615_v12 = vadd.f32 %v3426_v11, %v1574_v8  ;;  %v2627_v15 = vadd.f32 %v3434_v1, %v1637_v9  ;;  %v1576_v17 = vpop.f32.mrb[29].mxu0  ;;  %v1639_v18 = vpop.f32.mrb[33].mxu1 }
 0x328   : > { %v2616_v19 = vadd.f32 %v3426_v11, %v1576_v17  ;;  %v2628_v22 = vadd.f32 %v3434_v1, %v1639_v18  ;;  %v1578_v16 = vpop.f32.mrb[30].mxu0  ;;  %v1641_v23 = vpop.f32.mrb[34].mxu1  ;;  %1895 = vmatprep.subr.bf16.mxu0 %v1807_v6 }
 0x329   : > { %v2617_v24 = vadd.f32 %v3428_v13, %v1578_v16  ;;  %v2629_v28 = vadd.f32 %v3436_v4, %v1641_v23  ;;  %v1580_v30 = vpop.f32.mrb[31].mxu0  ;;  %v1643_v32 = vpop.f32.mrb[35].mxu1  ;;  %1896 = vmatpush1.bf16.msra.mxu0 %v1806_v3  ;;  %v1776_v26 = vmax.f32 %v2615_v12, 0.0  ;;  %v1792_v48 = vmax.f32 %v2627_v15, 0.0 }
 0x32a   : > { %v2618_v49 = vadd.f32 %v3428_v13, %v1580_v30  ;;  %v2630_v25 = vadd.f32 %v3436_v4, %v1643_v32  ;;  %v1777_v34 = vmax.f32 %v2616_v19, 0.0  ;;  %v1793_v35 = vmax.f32 %v2628_v22, 0.0 }
 0x32b   : > { %v1783_v33 = vmax.f32 %v2617_v24, 0.0  ;;  %v1799_v29 = vmax.f32 %v2629_v28, 0.0 }
 0x32c   : > { %v1784_v51 = vmax.f32 %v2618_v49, 0.0  ;;  %v1800_v37 = vmax.f32 %v2630_v25, 0.0 }
 0x32d   : > { %v1804_v38 = vpack.c.bf16 %v1783_v33, %v1776_v26  ;;  %v1813_v39 = vpack.c.bf16 %v1799_v29, %v1792_v48 }
 0x32e   : > { %v1805_v40 = vpack.c.bf16 %v1784_v51, %v1777_v34  ;;  %v1814_v41 = vpack.c.bf16 %v1800_v37, %v1793_v35  ;;  %v1584_v44 = vpop.f32.mrb[32].mxu0  ;;  %v2569_v5 = vpop.f32.mrb[36].mxu1 }
 0x32f   : > { %v2619_v10 = vadd.f32 %v3434_v1, %v1584_v44  ;;  %v2639_v47 = vadd.f32 %v3434_v1, %v2569_v5  ;;  %v1586_v54 = vpop.f32.mrb[33].mxu0  ;;  %v1733_v55 = vpop.f32.mrb[37].mxu1 }
 0x330   : > { %v2620_v56 = vadd.f32 %v3434_v1, %v1586_v54  ;;  %v2640_v57 = vadd.f32 %v3426_v11, %v1733_v55  ;;  %v1588_v31 = vpop.f32.mrb[34].mxu0  ;;  %v2570_v58 = vpop.f32.mrb[38].mxu1  ;;  %1842 = vmatprep.subr.bf16.mxu1 %v1805_v40  ;;  %1897 = vmatprep.subr.bf16.mxu0 %v1814_v41 }
 0x331   : > { %v2621_v53 = vadd.f32 %v3436_v4, %v1588_v31  ;;  %v2641_v59 = vadd.f32 %v3436_v4, %v2570_v58  ;;  %v1590_v60 = vpop.f32.mrb[35].mxu0  ;;  %v1736_v7 = vpop.f32.mrb[39].mxu1  ;;  %1843 = vmatpush1.bf16.msra.mxu1 %v1804_v38  ;;  %1898 = vmatpush1.bf16.msra.mxu0 %v1813_v39  ;;  %v1790_v21 = vmax.f32 %v2619_v10, 0.0  ;;  %v1796_v27 = vmax.f32 %v2639_v47, 0.0 }
 0x332   : > { %v2622_v14 = vadd.f32 %v3436_v4, %v1590_v60  ;;  %v2642_v20 = vadd.f32 %v3428_v13, %v1736_v7  ;;  %v1791_v45 = vmax.f32 %v2620_v56, 0.0  ;;  %v1782_v46 = vmax.f32 %v2640_v57, 0.0  ;;  %v2813_v39 = vpop.permute.xlu1 %2812 }
 0x333   : > { %v1797_v36 = vmax.f32 %v2621_v53, 0.0  ;;  %v1803_v61 = vmax.f32 %v2641_v59, 0.0  ;;  %v3487_v40 = vunpack.i.h.bf16 %v2813_v39  ;;  %v3489_v41 = vunpack.i.l.bf16 %v2813_v39 }
 0x334   : > { %v1798_v42 = vmax.f32 %v2622_v14, 0.0  ;;  %v1789_v62 = vmax.f32 %v2642_v20, 0.0  ;;  %2498 = vmatmul.mubr.msk.bf16.vlgmr.msra.gmra.mrb[44].mxu0 %vm583_vm3, %v3422_v50 }
 0x335   : > { %v1811_v63 = vpack.c.bf16 %v1797_v36, %v1790_v21  ;;  %v1817_v43 = vpack.c.bf16 %v1803_v61, %v1796_v27  ;;  %1937 = vmatprep.mubr.bf16.mxu0 %v2987_v0 }
 0x336   : > { %v1812_v2 = vpack.c.bf16 %v1798_v42, %v1791_v45  ;;  %v1810_v3 = vpack.c.bf16 %v1789_v62, %v1782_v46  ;;  %v1680_v6 = vpop.f32.mrb[36].mxu0 }
 0x337   : > { %v2631_v8 = vadd.f32 %v3426_v11, %v1680_v6  ;;  %v1682_v9 = vpop.f32.mrb[37].mxu0 }
 0x338   : > { %v2632_v12 = vadd.f32 %v3426_v11, %v1682_v9  ;;  %v1684_v15 = vpop.f32.mrb[38].mxu0  ;;  %1844 = vmatprep.subr.bf16.mxu1 %v1812_v2  ;;  %2571 = vmatprep.subr.bf16.mxu0 %v1810_v3 }
 0x339   : > { %v2633_v17 = vadd.f32 %v3428_v13, %v1684_v15  ;;  %v1686_v18 = vpop.f32.mrb[39].mxu0  ;;  %1845 = vmatpush1.bf16.msra.mxu1 %v1811_v63  ;;  %2572 = vmatpush3.bf16.msra.mxu0 %v1810_v3  ;;  %v1780_v22 = vmax.f32 %v2631_v8, 0.0 }
 0x33a   : > { %v2634_v19 = vadd.f32 %v3428_v13, %v1686_v18  ;;  %2573 = vmatprep.subr.bf16.mxu0 %v1817_v43  ;;  %v1781_v23 = vmax.f32 %v2632_v12, 0.0 }
 0x33b   : > { %v1787_v16 = vmax.f32 %v2633_v17, 0.0 }
 0x33c   : > { %v1788_v24 = vmax.f32 %v2634_v19, 0.0  ;;  %2496 = vmatmul.mubr.msk.bf16.vlgmr.msra.gmra.mrb[40].mxu1 %vm583_vm3, %v3422_v50  ;;  %2499 = vmatmul.mubr.msk.bf16.gmra.mrb[48].mxu0 %vm583_vm3, %v3424_v52 }
 0x33d   : > { %v1808_v11 = vpack.c.bf16 %v1787_v16, %v1780_v22  ;;  %2574 = vmatpush3.bf16.msra.mxu0 %v1817_v43  ;;  %1884 = vmatprep.mubr.bf16.mxu1 %v2987_v0 }
 0x33e   : > { %v1809_v28 = vpack.c.bf16 %v1788_v24, %v1781_v23  ;;  %v1690_v30 = vpop.f32.mrb[40].mxu0  ;;  %2575 = vmatprep.mubr.msk.bf16.mxu0 %vm583_vm3, %v3422_v50 }
 0x33f   : > { %v2635_v13 = vadd.f32 %v3434_v1, %v1690_v30  ;;  %v1692_v32 = vpop.f32.mrb[41].mxu0 }
 0x340   : > { %v2636_v49 = vadd.f32 %v3434_v1, %v1692_v32  ;;  %v1694_v25 = vpop.f32.mrb[42].mxu0  ;;  %1948 = vmatprep.subr.bf16.mxu1 %v1809_v28 }
 0x341   : > { %v2637_v26 = vadd.f32 %v3436_v4, %v1694_v25  ;;  %v1696_v48 = vpop.f32.mrb[43].mxu0  ;;  %1949 = vmatpush1.bf16.msra.mxu1 %v1808_v11  ;;  %v1794_v29 = vmax.f32 %v2635_v13, 0.0 }
 0x342   : > { %v2638_v33 = vadd.f32 %v3436_v4, %v1696_v48  ;;  %v1795_v35 = vmax.f32 %v2636_v49, 0.0  ;;  %v3484_v4 = vld [vmem:[#allocation5 + $0x10] sm:$0x3] }
 0x343   : > { %v1801_v34 = vmax.f32 %v2637_v26, 0.0  ;;  %v2141_v38 = vunpack.c.l.bf16 %v3484_v4 }
 0x344   : > { %v1802_v51 = vmax.f32 %v2638_v33, 0.0  ;;  %2497 = vmatmul.mubr.msk.bf16.gmra.mrb[44].mxu1 %vm583_vm3, %v3424_v52  ;;  %2576 = vmatmul.mubr.msk.bf16.vlgmr.msra.gmra.mrb[52].mxu0 %vm583_vm3, %v3424_v52 }
 0x345   : > { %v1815_v37 = vpack.c.bf16 %v1801_v34, %v1794_v29  ;;  %1980 = vmatprep.mubr.bf16.mxu1 %v2987_v0  ;;  %2182 = vmatprep.mubr.bf16.mxu0 %v2987_v0 }
 0x346   : > { %v1816_v1 = vpack.c.bf16 %v1802_v51, %v1795_v35  ;;  %2144 = vperm.xlu0 %2821, %v2141_v38  }
 0x348   : > { %1950 = vmatprep.subr.bf16.mxu1 %v1816_v1 }
 0x349   : > { %1951 = vmatpush1.bf16.msra.mxu1 %v1815_v37 }
 0x34c   : > { %2500 = vmatmul.mubr.msk.bf16.vlgmr.msra.gmra.mrb[48].mxu1 %vm583_vm3, %v3422_v50 }
 0x34d   : > { %1990 = vmatprep.mubr.bf16.mxu1 %v2987_v0 }
 0x354   : > { %2501 = vmatmul.mubr.msk.bf16.gmra.mrb[52].mxu1 %vm583_vm3, %v3424_v52  ;;  %v2818_v52 = vpop.permute.xlu1 %2817 }
 0x355   : > { %2223 = vmatprep.mubr.bf16.mxu1 %v2987_v0  ;;  %v3495_v53 = vunpack.i.l.bf16 %v2818_v52  ;;  %v3497_v7 = vunpack.i.h.bf16 %v2818_v52 }
 0x407   : > { %v1929_v44 = vpop.f32.mrb[44].mxu0 }
 0x408   : > { %v1931_v5 = vpop.f32.mrb[45].mxu0  ;;  %v2072_v50 = vadd.f32 %v3489_v41, %v1929_v44 }
 0x409   : > { %v2073_v10 = vadd.f32 %v3489_v41, %v1931_v5  ;;  %v1933_v47 = vpop.f32.mrb[46].mxu0 }
 0x40a   : > { %v2079_v54 = vadd.f32 %v3487_v40, %v1933_v47  ;;  %v2100_v55 = vmax.f32 %v2072_v50, 0.0  ;;  %v1935_v56 = vpop.f32.mrb[47].mxu0 }
 0x40b   : > { %v2101_v57 = vmax.f32 %v2073_v10, 0.0  ;;  %v2080_v31 = vadd.f32 %v3487_v40, %v1935_v56  ;;  %v2995_v10 = vmov 0.0  }
 0x40c   : > { %v2107_v58 = vmax.f32 %v2079_v54, 0.0 }
 0x40d   : > { %v2108_v59 = vmax.f32 %v2080_v31, 0.0 }
 0x40e   : > { %v2128_v60 = vpack.c.bf16 %v2107_v58, %v2100_v55 }
 0x40f   : > { %v1876_v14 = vpop.f32.mrb[40].mxu1  ;;  %v2129_v20 = vpack.c.bf16 %v2108_v59, %v2101_v57  ;;  %v1939_v21 = vpop.f32.mrb[48].mxu0 }
 0x410   : > { %v2070_v27 = vadd.f32 %v3489_v41, %v1876_v14  ;;  %v1878_v36 = vpop.f32.mrb[41].mxu1  ;;  %v1941_v61 = vpop.f32.mrb[49].mxu0  ;;  %v2086_v45 = vadd.f32 %v3495_v53, %v1939_v21 }
 0x411   : > { %v2071_v46 = vadd.f32 %v3489_v41, %v1878_v36  ;;  %v1880_v42 = vpop.f32.mrb[42].mxu1  ;;  %v2087_v62 = vadd.f32 %v3495_v53, %v1941_v61  ;;  %v1943_v63 = vpop.f32.mrb[50].mxu0  ;;  %2191 = vmatprep.subr.bf16.mxu1 %v2129_v20 }
 0x412   : > { %v2077_v43 = vadd.f32 %v3487_v40, %v1880_v42  ;;  %v1882_v2 = vpop.f32.mrb[43].mxu1  ;;  %v2093_v3 = vadd.f32 %v3497_v7, %v1943_v63  ;;  %v2114_v6 = vmax.f32 %v2086_v45, 0.0  ;;  %v1945_v8 = vpop.f32.mrb[51].mxu0  ;;  %2192 = vmatpush1.bf16.msra.mxu1 %v2128_v60  ;;  %v2098_v17 = vmax.f32 %v2070_v27, 0.0 }
 0x413   : > { %v2078_v9 = vadd.f32 %v3487_v40, %v1882_v2  ;;  %v2115_v12 = vmax.f32 %v2087_v62, 0.0  ;;  %v2094_v15 = vadd.f32 %v3497_v7, %v1945_v8  ;;  %v2099_v22 = vmax.f32 %v2071_v46, 0.0 }
 0x414   : > { %v2105_v18 = vmax.f32 %v2077_v43, 0.0  ;;  %v2121_v19 = vmax.f32 %v2093_v3, 0.0 }
 0x415   : > { %v2106_v16 = vmax.f32 %v2078_v9, 0.0  ;;  %v2122_v23 = vmax.f32 %v2094_v15, 0.0 }
 0x416   : > { %v2126_v24 = vpack.c.bf16 %v2105_v18, %v2098_v17  ;;  %v2135_v11 = vpack.c.bf16 %v2121_v19, %v2114_v6 }
 0x417   : > { %v2127_v28 = vpack.c.bf16 %v2106_v16, %v2099_v22  ;;  %v2136_v30 = vpack.c.bf16 %v2122_v23, %v2115_v12  ;;  %v1886_v13 = vpop.f32.mrb[44].mxu1  ;;  %v2577_v32 = vpop.f32.mrb[52].mxu0 }
 0x418   : > { %v2084_v49 = vadd.f32 %v3495_v53, %v1886_v13  ;;  %v2090_v25 = vadd.f32 %v3495_v53, %v2577_v32  ;;  %v1888_v26 = vpop.f32.mrb[45].mxu1  ;;  %v2035_v48 = vpop.f32.mrb[53].mxu0 }
 0x419   : > { %v2085_v33 = vadd.f32 %v3495_v53, %v1888_v26  ;;  %v2076_v29 = vadd.f32 %v3489_v41, %v2035_v48  ;;  %v1890_v34 = vpop.f32.mrb[46].mxu1  ;;  %v2578_v35 = vpop.f32.mrb[54].mxu0  ;;  %2150 = vmatprep.subr.bf16.mxu0 %v2127_v28  ;;  %2193 = vmatprep.subr.bf16.mxu1 %v2136_v30 }
 0x41a   : > { %v2118_v51 = vmax.f32 %v2090_v25, 0.0  ;;  %v2091_v37 = vadd.f32 %v3497_v7, %v1890_v34  ;;  %v2097_v1 = vadd.f32 %v3497_v7, %v2578_v35  ;;  %v1892_v38 = vpop.f32.mrb[47].mxu1  ;;  %v2038_v39 = vpop.f32.mrb[55].mxu0  ;;  %2151 = vmatpush1.bf16.msra.mxu0 %v2126_v24  ;;  %2194 = vmatpush1.bf16.msra.mxu1 %v2135_v11  ;;  %v2112_v47 = vmax.f32 %v2084_v49, 0.0 }
 0x41b   : > { %v2104_v44 = vmax.f32 %v2076_v29, 0.0  ;;  %v2092_v5 = vadd.f32 %v3497_v7, %v1892_v38  ;;  %v2083_v50 = vadd.f32 %v3487_v40, %v2038_v39  ;;  %2579 = vmatprep.subr.bf16.mxu1 %v2995_v10  ;;  %v2113_v55 = vmax.f32 %v2085_v33, 0.0 }
 0x41c   : > { %v2119_v52 = vmax.f32 %v2091_v37, 0.0  ;;  %v2125_v54 = vmax.f32 %v2097_v1, 0.0 }
 0x41d   : > { %v2120_v56 = vmax.f32 %v2092_v5, 0.0  ;;  %v2111_v57 = vmax.f32 %v2083_v50, 0.0  ;;  %2505 = vmatmul.mubr.msk.bf16.vlgmr.msra.gmra.mrb[56].mxu1 %vm583_vm3, %v3484_v4 }
 0x41e   : > { %v2133_v31 = vpack.c.bf16 %v2119_v52, %v2112_v47  ;;  %v2139_v58 = vpack.c.bf16 %v2125_v54, %v2118_v51  ;;  %2583 = vmatprep.mubr.msk.bf16.mxu1 %vm2996_vm6, %v2995_v10 }
 0x41f   : > { %v2134_v59 = vpack.c.bf16 %v2120_v56, %v2113_v55  ;;  %v2132_v60 = vpack.c.bf16 %v2111_v57, %v2104_v44  ;;  %v1982_v14 = vpop.f32.mrb[48].mxu1 }
 0x420   : > { %v2074_v20 = vadd.f32 %v3489_v41, %v1982_v14  ;;  %v1984_v21 = vpop.f32.mrb[49].mxu1 }
 0x421   : > { %v2075_v27 = vadd.f32 %v3489_v41, %v1984_v21  ;;  %v1986_v36 = vpop.f32.mrb[50].mxu1  ;;  %2152 = vmatprep.subr.bf16.mxu0 %v2134_v59  ;;  %2580 = vmatpush3.bf16.msra.mxu1 %v2132_v60 }
 0x422   : > { %v2081_v61 = vadd.f32 %v3487_v40, %v1986_v36  ;;  %v1988_v45 = vpop.f32.mrb[51].mxu1  ;;  %2153 = vmatpush1.bf16.msra.mxu0 %v2133_v31  ;;  %2581 = vmatprep.subr.bf16.mxu1 %v2995_v10  ;;  %v2102_v42 = vmax.f32 %v2074_v20, 0.0 }
 0x423   : > { %v2082_v46 = vadd.f32 %v3487_v40, %v1988_v45  ;;  %v2103_v63 = vmax.f32 %v2075_v27, 0.0 }
 0x424   : > { %v2109_v62 = vmax.f32 %v2081_v61, 0.0 }
 0x425   : > { %v2110_v43 = vmax.f32 %v2082_v46, 0.0  ;;  %2582 = vmatpush3.bf16.msra.mxu1 %v2139_v58  ;;  %2504 = vmatmul.mubr.msk.bf16.vlgmr.msra.gmra.mrb[56].mxu0 %vm583_vm3, %v3484_v4 }
 0x426   : > { %v2130_v2 = vpack.c.bf16 %v2109_v62, %v2102_v42  ;;  %2264 = vmatprep.mubr.bf16.mxu0 %v2987_v0 }
 0x427   : > { %v2131_v41 = vpack.c.bf16 %v2110_v43, %v2103_v63  ;;  %v1992_v3 = vpop.f32.mrb[52].mxu1 }
 0x428   : > { %v2088_v6 = vadd.f32 %v3495_v53, %v1992_v3  ;;  %v1994_v8 = vpop.f32.mrb[53].mxu1  ;;  %2584 = vmatmul.mubr.msk.bf16.vlgmr.msra.gmra.mrb[60].mxu1 %vm583_vm3, %v3484_v4 }
 0x429   : > { %v2089_v40 = vadd.f32 %v3495_v53, %v1994_v8  ;;  %v1996_v9 = vpop.f32.mrb[54].mxu1  ;;  %2232 = vmatprep.subr.bf16.mxu0 %v2131_v41  ;;  %v2145_v53 = vpop.permute.xlu0 %2144 }
 0x42a   : > { %v2095_v12 = vadd.f32 %v3497_v7, %v1996_v9  ;;  %v1998_v15 = vpop.f32.mrb[55].mxu1  ;;  %2233 = vmatpush1.bf16.msra.mxu0 %v2130_v2  ;;  %v2116_v0 = vmax.f32 %v2088_v6, 0.0 }
 0x42b   : > { %v2096_v17 = vadd.f32 %v3497_v7, %v1998_v15  ;;  %v2117_v19 = vmax.f32 %v2089_v40, 0.0 }
 0x42c   : > { %v2123_v18 = vmax.f32 %v2095_v12, 0.0 }
 0x42d   : > { %v2124_v22 = vmax.f32 %v2096_v17, 0.0 }
 0x42e   : > { %v2137_v16 = vpack.c.bf16 %v2123_v18, %v2116_v0 }
 0x42f   : > { %v2138_v23 = vpack.c.bf16 %v2124_v22, %v2117_v19 }
 0x431   : > { %2234 = vmatprep.subr.bf16.mxu0 %v2138_v23 }
 0x432   : > { %2235 = vmatpush1.bf16.msra.mxu0 %v2137_v16 }
 0x435   : > { %2506 = vmatmul.mubr.msk.bf16.vlgmr.msra.gmra.mrb[60].mxu0 %vm583_vm3, %v3484_v4 }
 0x4f0   : > { %v2225_v24 = vpop.f32.mrb[56].mxu1 }
 0x4f1   : > { %v2226_v11 = vadd.f32 %v2225_v24, %v2145_v53  ;;  %v2227_v28 = vpop.f32.mrb[57].mxu1 }
 0x4f2   : > { %v2228_v30 = vadd.f32 %v2227_v28, %v2145_v53  ;;  %v2229_v13 = vpop.f32.mrb[58].mxu1 }
 0x4f3   : > { %v2230_v32 = vpop.f32.mrb[59].mxu1 }
 0x4f4   : > { %v2320_v7 = vcombine.low %v2226_v11, %v2228_v30 }
 0x4f6   : > { %2326 = vst [vmem:[%s176_s4 + $0x8] sm:$0x77] %v2320_v7 }
 0x4f8   : > { %v2184_v49 = vpop.f32.mrb[56].mxu0 }
 0x4f9   : > { %v2186_v25 = vpop.f32.mrb[57].mxu0  ;;  %v2185_v26 = vadd.f32 %v2184_v49, %v2145_v53 }
 0x4fa   : > { %v2188_v48 = vpop.f32.mrb[58].mxu0  ;;  %v2187_v33 = vadd.f32 %v2186_v25, %v2145_v53 }
 0x4fb   : > { %v2189_v29 = vpop.f32.mrb[59].mxu0  ;;  %v2307_v34 = vpop.f32.mrb[60].mxu1 }
 0x4fc   : > { %v2319_v4 = vcombine.low %v2185_v26, %v2187_v33  ;;  %v2308_v35 = vadd.f32 %v2307_v34, %v2145_v53  ;;  %v2585_v51 = vpop.f32.mrb[61].mxu1 }
 0x4fd   : > { %v2310_v37 = vpop.f32.mrb[62].mxu1 }
 0x4fe   : > { %2325 = vst [vmem:[%s176_s4] sm:$0x77] %v2319_v4  ;;  %2328 = vst [vmem:[%s176_s4 + $0x18] sm:$0x7] %v2308_v35  ;;  %v2586_v1 = vpop.f32.mrb[63].mxu1 }
 0x508   : > { %v2266_v38 = vpop.f32.mrb[60].mxu0 }
 0x509   : > { %v2267_v39 = vadd.f32 %v2266_v38, %v2145_v53  ;;  %v2268_v44 = vpop.f32.mrb[61].mxu0 }
 0x50a   : > { %v2269_v5 = vadd.f32 %v2268_v44, %v2145_v53  ;;  %v2270_v50 = vpop.f32.mrb[62].mxu0 }
 0x50b   : > { %v2271_v10 = vpop.f32.mrb[63].mxu0 }
 0x50c   : > { %v2321_v47 = vcombine.low %v2267_v39, %v2269_v5 }
 0x50e   : > { %2327 = vst [vmem:[%s176_s4 + $0x10] sm:$0x77] %v2321_v47 }
 0x50f   : > { %2921 = shalt.err (!%p2918_p11)
}
 0x510   : > { %s2922_s3 = scalar_lea.hbm %s3537_s27, 448  ;;  %s2926_s6 = scalar_lea.hbm %s3583_s2, 896 }
 0x511   : > { %p2923_p13 = scmp.ne.s32.totalorder %s3537_s27, %s2922_s3  ;;  %p2927_p12 = scmp.lt.u32.totalorder %s3537_s27, %s3583_s2 }
 0x512   : > { %p2928_p0 = scmp.lt.u32.totalorder %s2926_s6, %s2922_s3  ;;  %p2930_p8 = scmp.lt.u32.totalorder %s2922_s3, %s3537_s27 }
 0x513   : > { %p2924_p2 = pnand %p2923_p13, %p3601_p9 }
 0x514   : > { %p2929_p3 = por %p2928_p0, %p2927_p12 }
 0x515   : > { %p2925_p6 = pneg %p2924_p2 }
 0x516   : > { %p2931_p10 = por %p2930_p8, %p2929_p3 }
 0x518   : > { %p2932_p1 = pnand %p2931_p10, %p2925_p6 }
 0x51a   : > { %2935 = shalt.err (!%p2932_p1)
}
 0x51b   : > { %2709 = dma.vmem_to_hbm [thread:$0]  (%p3601_p9), %s3539_s26, 448, %s3537_s27, %s2330_s17  }
 0x51c PF: > { %s2356_s20 = sand.u32 1, %s2966_s9   ;;  %p3602_p4 = scmp.ne.s32.totalorder %s3591_s22, 0 }
 0x51d   : > { %p3603_p7 = scmp.ge.s32.totalorder %s2978_s12, 2  ;;  %s2357_s23 = scalar_lea.sflag [#allocation4], %s2356_s20 }
 0x51f   : > { %p2720_p5 = pnand %p3603_p7, %p3602_p4 }
 0x521   : > { %2961 = dma.done.wait (!%p2720_p5), %s2357_s23, 448  }
 0x522   : > { %2963 = vsyncadd (!%p2720_p5), %s2357_s23, 4294966848  ;;  %p16_p11 = scmp.ge.s32.totalorder %s3038_s15, 4   ;;  %s3604_s9 = smov %s2970_s10 }
 0x523   : > { %s3605_s10 = smov %s2974_s11  ;;  %s3606_s11 = smov %s3050_s18 }
 0x524   : > { %s3607_s12 = smov %s3038_s15  ;;  %18 = sbr.rel (!%p16_p11) target bundleno = 6 (0x6), region = 77 }
 0x52b   :  { %2362 = vsyncpa [#allocation3], 1 }
 0x52c   :  { %2364 = vsyncpa [#allocation3 + $0x1], 1 }
 0x52d   :  { %2365 = vsyncpa [#allocation6], 1 }
 0x52e   :  { %2366 = vsyncpa [#allocation4], 1 }
 0x52f   :  { %2368 = vsyncpa [#allocation4 + $0x1], 1 }

</bundles_post_ra>
